<compile_context>
chip_gen: v6e
topology: v6e:2x2x1
jax: 0.10.0
libtpu: 0.0.40
codegen_flags: <defaults>
</compile_context>

<pallas_src>
import functools

import jax
import jax.numpy as jnp
from jax.experimental import pallas as pl
from jax.experimental.pallas import tpu as pltpu

EPS = 1e-5


def _residual_block_kernel(masks_ref, x_ref, wt1_ref, wt2_ref, o_ref, *, H, W):
    # masks_ref: (5, C, S_pad) f32 [interior, row0, row_last, col0, col_last]
    # x_ref:     (1, C, S_pad)     reflection-padded x, spatial flattened (one image)
    # wt*_ref:   (9, C, C)         per-tap transposed weights, wt[t] = w[dy,dx].T
    # o_ref:     (1, C, S_pad)     y2 + x in the padded flat frame (borders = garbage)
    Hp, Wp = H + 2, W + 2
    C = x_ref.shape[1]
    S_pad = x_ref.shape[2]

    interior = masks_ref[0]          # (C, S_pad) f32, 1.0 on the H*W interior pixels
    row0 = masks_ref[1] > 0.5        # padded row 0
    rowl = masks_ref[2] > 0.5        # padded row Hp-1
    col0 = masks_ref[3] > 0.5        # padded col 0
    coll = masks_ref[4] > 0.5        # padded col Wp-1

    x = x_ref[0].astype(jnp.float32)  # (C, S_pad)

    # Flat-frame offsets of the 9 conv taps.
    taps = [(dy - 1) * Wp + (dx - 1) for dy in range(3) for dx in range(3)]

    def conv3x3(p, wt_ref):
        # acc[c_out, o] += sum_cin wt[t, c_out, c_in] * p[c_in, o + taps[t]]
        # The shift is a lane rotation (XLU); interior outputs never see the
        # roll wrap-around (only border/tail lanes do, and those are masked).
        acc = jnp.zeros((C, S_pad), jnp.float32)
        for t, s in enumerate(taps):
            shifted = p if s == 0 else pltpu.roll(p, shift=(-s) % S_pad, axis=1)
            acc = acc + jnp.dot(wt_ref[t], shifted,
                                preferred_element_type=jnp.float32)
        return acc

    inv_hw = 1.0 / float(H * W)

    def instance_norm(z):
        # Per-channel stats over the H*W interior pixels, single fused pass.
        zm = z * interior
        s1 = jnp.sum(zm, axis=1, keepdims=True)        # (C, 1) sum
        s2 = jnp.sum(zm * z, axis=1, keepdims=True)    # (C, 1) sum of squares
        mean = s1 * inv_hw
        var = s2 * inv_hw - mean * mean                # biased variance
        return (z - mean) * jax.lax.rsqrt(var + EPS)

    def repad(y):
        # Rebuild the ReflectionPad2d(1) border lanes of the flat frame from the
        # interior of y (rows first, then columns -> PyTorch corner semantics).
        y = jnp.where(row0, pltpu.roll(y, shift=(-2 * Wp) % S_pad, axis=1), y)
        y = jnp.where(rowl, pltpu.roll(y, shift=2 * Wp, axis=1), y)
        y = jnp.where(col0, pltpu.roll(y, shift=S_pad - 2, axis=1), y)
        y = jnp.where(coll, pltpu.roll(y, shift=2, axis=1), y)
        return y

    # Block 1: conv -> instance norm -> relu (conv bias cancels inside the norm).
    y1 = jnp.maximum(instance_norm(conv3x3(x, wt1_ref)), 0.0)
    # Block 2: re-pad -> conv -> instance norm (no activation).
    y2 = instance_norm(conv3x3(repad(y1), wt2_ref))
    # Residual add; border/tail lanes are garbage and get cropped by the wrapper.
    o_ref[0] = (y2 + x).astype(o_ref.dtype)


@jax.jit
def residual_block_nchw(x_nchw, w1, b1, w2, b2):
    """ResidualBlock forward.  x_nchw: (N,C,H,W) f32; w*: (3,3,C,C) HWIO; b*: (C,)."""
    # NOTE: InstanceNorm2d(affine=False) directly after each conv removes any
    # per-channel constant exactly, so the conv biases are mathematical no-ops.
    del b1, b2
    N, C, H, W = x_nchw.shape
    Hp, Wp = H + 2, W + 2
    S = Hp * Wp
    S_pad = ((S + 127) // 128) * 128            # lane-dense flat length

    # ReflectionPad2d(1) + flatten spatial into lanes (wrapper-side plumbing).
    xp = jnp.pad(x_nchw, ((0, 0), (0, 0), (1, 1), (1, 1)), mode="reflect")
    xp = xp.reshape(N, C, S).astype(jnp.float32)
    xp = jnp.pad(xp, ((0, 0), (0, 0), (0, S_pad - S)))

    # Per-tap transposed weights: wt[t, c_out, c_in] = w[dy, dx, c_in, c_out].
    wt1 = jnp.transpose(w1, (0, 1, 3, 2)).reshape(9, C, C).astype(jnp.float32)
    wt2 = jnp.transpose(w2, (0, 1, 3, 2)).reshape(9, C, C).astype(jnp.float32)

    # Flat-frame masks, built once outside the kernel.
    lane = jnp.arange(S_pad)
    row, col = lane // Wp, lane % Wp
    valid = lane < S
    masks = jnp.stack([
        valid & (row >= 1) & (row <= H) & (col >= 1) & (col <= W),  # interior
        valid & (row == 0),
        valid & (row == Hp - 1),
        valid & (col == 0),
        valid & (col == Wp - 1),
    ]).astype(jnp.float32)                               # (5, S_pad)
    masks = jnp.broadcast_to(masks[:, None, :], (5, C, S_pad))

    kernel = functools.partial(_residual_block_kernel, H=H, W=W)
    out_flat = pl.pallas_call(
        kernel,
        out_shape=jax.ShapeDtypeStruct((N, C, S_pad), jnp.float32),
        grid_spec=pltpu.PrefetchScalarGridSpec(
            num_scalar_prefetch=0,
            grid=(N,),
            in_specs=[
                pl.BlockSpec((5, C, S_pad), lambda b: (0, 0, 0)),
                pl.BlockSpec((1, C, S_pad), lambda b: (b, 0, 0)),
                pl.BlockSpec((9, C, C), lambda b: (0, 0, 0)),
                pl.BlockSpec((9, C, C), lambda b: (0, 0, 0)),
            ],
            out_specs=pl.BlockSpec((1, C, S_pad), lambda b: (b, 0, 0)),
        ),
        compiler_params=pltpu.CompilerParams(
            dimension_semantics=("parallel",)),
    )(masks, xp, wt1, wt2)

    # Crop the padded flat frame back to (N, C, H, W).
    out = out_flat[:, :, :S].reshape(N, C, Hp, Wp)[:, :, 1:-1, 1:-1]
    return out


def _reference_nchw(x_nchw, w1, b1, w2, b2):
    """Pure-JAX reference (same math as the PyTorch module, no Pallas)."""
    x = jnp.transpose(x_nchw, (0, 2, 3, 1))

    def block(y, w, b, relu):
        yp = jnp.pad(y, ((0, 0), (1, 1), (1, 1), (0, 0)), mode="reflect")
        z = jax.lax.conv_general_dilated(
            yp, w, window_strides=(1, 1), padding="VALID",
            dimension_numbers=("NHWC", "HWIO", "NHWC")) + b.reshape(1, 1, 1, -1)
        mean = jnp.mean(z, axis=(1, 2), keepdims=True)
        var = jnp.mean(jnp.square(z - mean), axis=(1, 2), keepdims=True)
        z = (z - mean) * jax.lax.rsqrt(var + EPS)
        return jnp.maximum(z, 0.0) if relu else z

    y1 = block(x, w1, b1, True)
    y2 = block(y1, w2, b2, False)
    return jnp.transpose(y2 + x, (0, 3, 1, 2))


if __name__ == "__main__":
    N, C, H, W = 2, 4, 16, 16   # matches ResidualBlock(channels=4)
    key = jax.random.PRNGKey(0)
    kx, k1, kb1, k2, kb2 = jax.random.split(key, 5)

    x = jax.random.normal(kx, (N, C, H, W), jnp.float32)
    # Deterministic synthetic parameters (Conv2d(C, C, 3) x 2, with bias), HWIO.
    w1 = jax.random.normal(k1, (3, 3, C, C), jnp.float32) * 0.2
    b1 = jax.random.normal(kb1, (C,), jnp.float32) * 0.1
    w2 = jax.random.normal(k2, (3, 3, C, C), jnp.float32) * 0.2
    b2 = jax.random.normal(kb2, (C,), jnp.float32) * 0.1

    out = residual_block_nchw(x, w1, b1, w2, b2)
    out = jax.block_until_ready(out)

    ref = _reference_nchw(x, w1, b1, w2, b2)
    assert out.shape == (N, C, H, W)
    assert jnp.allclose(out, ref, atol=1e-4, rtol=1e-4), (
        f"max abs err {jnp.max(jnp.abs(out - ref))}")

    print("KERNEL_OK")
</pallas_src>

<mosaic_0001>
module attributes {stable_mosaic.version = 11 : i64} {
  func.func @_residual_block_kernel(%arg0: i32, %arg1: memref<5x4x384xf32, #tpu.memory_space<vmem>>, %arg2: memref<1x4x384xf32, #tpu.memory_space<vmem>>, %arg3: memref<9x4x4xf32, #tpu.memory_space<vmem>>, %arg4: memref<9x4x4xf32, #tpu.memory_space<vmem>>, %arg5: memref<1x4x384xf32, #tpu.memory_space<vmem>>) attributes {dimension_semantics = [#tpu.dimension_semantics<parallel>], iteration_bounds = array<i64: 2>, scalar_prefetch = 0 : i64, scratch_operands = 0 : i64, tpu.core_type = #tpu.core_type<tc>, window_params = [{pipeline_mode = #tpu.pipeline_mode<synchronous>, transform_indices = @transform_0, window_bounds = array<i64: 5, 4, 384>}, {transform_indices = @transform_1, window_bounds = array<i64: 1, 4, 384>}, {pipeline_mode = #tpu.pipeline_mode<synchronous>, transform_indices = @transform_2, window_bounds = array<i64: 9, 4, 4>}, {pipeline_mode = #tpu.pipeline_mode<synchronous>, transform_indices = @transform_3, window_bounds = array<i64: 9, 4, 4>}, {transform_indices = @transform_4, window_bounds = array<i64: 1, 4, 384>}]} {
    %c0 = arith.constant 0 : index
    %c0_0 = arith.constant 0 : index
    %c0_1 = arith.constant 0 : index
    %0 = vector.load %arg1[%c0, %c0_0, %c0_1] : memref<5x4x384xf32, #tpu.memory_space<vmem>>, vector<1x4x384xf32>
    %1 = vector.shape_cast %0 : vector<1x4x384xf32> to vector<4x384xf32>
    %c1 = arith.constant 1 : index
    %c0_2 = arith.constant 0 : index
    %c0_3 = arith.constant 0 : index
    %2 = vector.load %arg1[%c1, %c0_2, %c0_3] : memref<5x4x384xf32, #tpu.memory_space<vmem>>, vector<1x4x384xf32>
    %3 = vector.shape_cast %2 : vector<1x4x384xf32> to vector<4x384xf32>
    %cst = arith.constant 5.000000e-01 : f32
    %4 = vector.broadcast %cst : f32 to vector<4x384xf32>
    %5 = arith.cmpf ogt, %3, %4 : vector<4x384xf32>
    %c2 = arith.constant 2 : index
    %c0_4 = arith.constant 0 : index
    %c0_5 = arith.constant 0 : index
    %6 = vector.load %arg1[%c2, %c0_4, %c0_5] : memref<5x4x384xf32, #tpu.memory_space<vmem>>, vector<1x4x384xf32>
    %7 = vector.shape_cast %6 : vector<1x4x384xf32> to vector<4x384xf32>
    %cst_6 = arith.constant 5.000000e-01 : f32
    %8 = vector.broadcast %cst_6 : f32 to vector<4x384xf32>
    %9 = arith.cmpf ogt, %7, %8 : vector<4x384xf32>
    %c3 = arith.constant 3 : index
    %c0_7 = arith.constant 0 : index
    %c0_8 = arith.constant 0 : index
    %10 = vector.load %arg1[%c3, %c0_7, %c0_8] : memref<5x4x384xf32, #tpu.memory_space<vmem>>, vector<1x4x384xf32>
    %11 = vector.shape_cast %10 : vector<1x4x384xf32> to vector<4x384xf32>
    %cst_9 = arith.constant 5.000000e-01 : f32
    %12 = vector.broadcast %cst_9 : f32 to vector<4x384xf32>
    %13 = arith.cmpf ogt, %11, %12 : vector<4x384xf32>
    %c4 = arith.constant 4 : index
    %c0_10 = arith.constant 0 : index
    %c0_11 = arith.constant 0 : index
    %14 = vector.load %arg1[%c4, %c0_10, %c0_11] : memref<5x4x384xf32, #tpu.memory_space<vmem>>, vector<1x4x384xf32>
    %15 = vector.shape_cast %14 : vector<1x4x384xf32> to vector<4x384xf32>
    %cst_12 = arith.constant 5.000000e-01 : f32
    %16 = vector.broadcast %cst_12 : f32 to vector<4x384xf32>
    %17 = arith.cmpf ogt, %15, %16 : vector<4x384xf32>
    %c0_13 = arith.constant 0 : index
    %c0_14 = arith.constant 0 : index
    %c0_15 = arith.constant 0 : index
    %18 = vector.load %arg2[%c0_13, %c0_14, %c0_15] : memref<1x4x384xf32, #tpu.memory_space<vmem>>, vector<1x4x384xf32>
    %19 = vector.shape_cast %18 : vector<1x4x384xf32> to vector<4x384xf32>
    %cst_16 = arith.constant 0.000000e+00 : f32
    %20 = vector.broadcast %cst_16 : f32 to vector<4x384xf32>
    %c19_i32 = arith.constant 19 : i32
    %21 = tpu.dynamic_rotate %19 by %c19_i32 dim 1 : vector<4x384xf32>, i32 -> vector<4x384xf32>
    %c0_17 = arith.constant 0 : index
    %c0_18 = arith.constant 0 : index
    %c0_19 = arith.constant 0 : index
    %22 = vector.load %arg3[%c0_17, %c0_18, %c0_19] : memref<9x4x4xf32, #tpu.memory_space<vmem>>, vector<1x4x4xf32>
    %23 = vector.shape_cast %22 : vector<1x4x4xf32> to vector<4x4xf32>
    %cst_20 = arith.constant dense<0.000000e+00> : vector<4x384xf32>
    %24 = tpu.matmul %23, %21, %cst_20 {dimension_numbers = #tpu.dot_dimension_numbers<[1], [0], [0], [1], [0, 0, 1, 1], [], []>} : vector<4x4xf32>, vector<4x384xf32>, vector<4x384xf32> -> vector<4x384xf32>
    %25 = arith.addf %20, %24 : vector<4x384xf32>
    %c18_i32 = arith.constant 18 : i32
    %26 = tpu.dynamic_rotate %19 by %c18_i32 dim 1 : vector<4x384xf32>, i32 -> vector<4x384xf32>
    %c1_21 = arith.constant 1 : index
    %c0_22 = arith.constant 0 : index
    %c0_23 = arith.constant 0 : index
    %27 = vector.load %arg3[%c1_21, %c0_22, %c0_23] : memref<9x4x4xf32, #tpu.memory_space<vmem>>, vector<1x4x4xf32>
    %28 = vector.shape_cast %27 : vector<1x4x4xf32> to vector<4x4xf32>
    %cst_24 = arith.constant dense<0.000000e+00> : vector<4x384xf32>
    %29 = tpu.matmul %28, %26, %cst_24 {dimension_numbers = #tpu.dot_dimension_numbers<[1], [0], [0], [1], [0, 0, 1, 1], [], []>} : vector<4x4xf32>, vector<4x384xf32>, vector<4x384xf32> -> vector<4x384xf32>
    %30 = arith.addf %25, %29 : vector<4x384xf32>
    %c17_i32 = arith.constant 17 : i32
    %31 = tpu.dynamic_rotate %19 by %c17_i32 dim 1 : vector<4x384xf32>, i32 -> vector<4x384xf32>
    %c2_25 = arith.constant 2 : index
    %c0_26 = arith.constant 0 : index
    %c0_27 = arith.constant 0 : index
    %32 = vector.load %arg3[%c2_25, %c0_26, %c0_27] : memref<9x4x4xf32, #tpu.memory_space<vmem>>, vector<1x4x4xf32>
    %33 = vector.shape_cast %32 : vector<1x4x4xf32> to vector<4x4xf32>
    %cst_28 = arith.constant dense<0.000000e+00> : vector<4x384xf32>
    %34 = tpu.matmul %33, %31, %cst_28 {dimension_numbers = #tpu.dot_dimension_numbers<[1], [0], [0], [1], [0, 0, 1, 1], [], []>} : vector<4x4xf32>, vector<4x384xf32>, vector<4x384xf32> -> vector<4x384xf32>
    %35 = arith.addf %30, %34 : vector<4x384xf32>
    %c1_i32 = arith.constant 1 : i32
    %36 = tpu.dynamic_rotate %19 by %c1_i32 dim 1 : vector<4x384xf32>, i32 -> vector<4x384xf32>
    %c3_29 = arith.constant 3 : index
    %c0_30 = arith.constant 0 : index
    %c0_31 = arith.constant 0 : index
    %37 = vector.load %arg3[%c3_29, %c0_30, %c0_31] : memref<9x4x4xf32, #tpu.memory_space<vmem>>, vector<1x4x4xf32>
    %38 = vector.shape_cast %37 : vector<1x4x4xf32> to vector<4x4xf32>
    %cst_32 = arith.constant dense<0.000000e+00> : vector<4x384xf32>
    %39 = tpu.matmul %38, %36, %cst_32 {dimension_numbers = #tpu.dot_dimension_numbers<[1], [0], [0], [1], [0, 0, 1, 1], [], []>} : vector<4x4xf32>, vector<4x384xf32>, vector<4x384xf32> -> vector<4x384xf32>
    %40 = arith.addf %35, %39 : vector<4x384xf32>
    %c4_33 = arith.constant 4 : index
    %c0_34 = arith.constant 0 : index
    %c0_35 = arith.constant 0 : index
    %41 = vector.load %arg3[%c4_33, %c0_34, %c0_35] : memref<9x4x4xf32, #tpu.memory_space<vmem>>, vector<1x4x4xf32>
    %42 = vector.shape_cast %41 : vector<1x4x4xf32> to vector<4x4xf32>
    %cst_36 = arith.constant dense<0.000000e+00> : vector<4x384xf32>
    %43 = tpu.matmul %42, %19, %cst_36 {dimension_numbers = #tpu.dot_dimension_numbers<[1], [0], [0], [1], [0, 0, 1, 1], [], []>} : vector<4x4xf32>, vector<4x384xf32>, vector<4x384xf32> -> vector<4x384xf32>
    %44 = arith.addf %40, %43 : vector<4x384xf32>
    %c383_i32 = arith.constant 383 : i32
    %45 = tpu.dynamic_rotate %19 by %c383_i32 dim 1 : vector<4x384xf32>, i32 -> vector<4x384xf32>
    %c5 = arith.constant 5 : index
    %c0_37 = arith.constant 0 : index
    %c0_38 = arith.constant 0 : index
    %46 = vector.load %arg3[%c5, %c0_37, %c0_38] : memref<9x4x4xf32, #tpu.memory_space<vmem>>, vector<1x4x4xf32>
    %47 = vector.shape_cast %46 : vector<1x4x4xf32> to vector<4x4xf32>
    %cst_39 = arith.constant dense<0.000000e+00> : vector<4x384xf32>
    %48 = tpu.matmul %47, %45, %cst_39 {dimension_numbers = #tpu.dot_dimension_numbers<[1], [0], [0], [1], [0, 0, 1, 1], [], []>} : vector<4x4xf32>, vector<4x384xf32>, vector<4x384xf32> -> vector<4x384xf32>
    %49 = arith.addf %44, %48 : vector<4x384xf32>
    %c367_i32 = arith.constant 367 : i32
    %50 = tpu.dynamic_rotate %19 by %c367_i32 dim 1 : vector<4x384xf32>, i32 -> vector<4x384xf32>
    %c6 = arith.constant 6 : index
    %c0_40 = arith.constant 0 : index
    %c0_41 = arith.constant 0 : index
    %51 = vector.load %arg3[%c6, %c0_40, %c0_41] : memref<9x4x4xf32, #tpu.memory_space<vmem>>, vector<1x4x4xf32>
    %52 = vector.shape_cast %51 : vector<1x4x4xf32> to vector<4x4xf32>
    %cst_42 = arith.constant dense<0.000000e+00> : vector<4x384xf32>
    %53 = tpu.matmul %52, %50, %cst_42 {dimension_numbers = #tpu.dot_dimension_numbers<[1], [0], [0], [1], [0, 0, 1, 1], [], []>} : vector<4x4xf32>, vector<4x384xf32>, vector<4x384xf32> -> vector<4x384xf32>
    %54 = arith.addf %49, %53 : vector<4x384xf32>
    %c366_i32 = arith.constant 366 : i32
    %55 = tpu.dynamic_rotate %19 by %c366_i32 dim 1 : vector<4x384xf32>, i32 -> vector<4x384xf32>
    %c7 = arith.constant 7 : index
    %c0_43 = arith.constant 0 : index
    %c0_44 = arith.constant 0 : index
    %56 = vector.load %arg3[%c7, %c0_43, %c0_44] : memref<9x4x4xf32, #tpu.memory_space<vmem>>, vector<1x4x4xf32>
    %57 = vector.shape_cast %56 : vector<1x4x4xf32> to vector<4x4xf32>
    %cst_45 = arith.constant dense<0.000000e+00> : vector<4x384xf32>
    %58 = tpu.matmul %57, %55, %cst_45 {dimension_numbers = #tpu.dot_dimension_numbers<[1], [0], [0], [1], [0, 0, 1, 1], [], []>} : vector<4x4xf32>, vector<4x384xf32>, vector<4x384xf32> -> vector<4x384xf32>
    %59 = arith.addf %54, %58 : vector<4x384xf32>
    %c365_i32 = arith.constant 365 : i32
    %60 = tpu.dynamic_rotate %19 by %c365_i32 dim 1 : vector<4x384xf32>, i32 -> vector<4x384xf32>
    %c8 = arith.constant 8 : index
    %c0_46 = arith.constant 0 : index
    %c0_47 = arith.constant 0 : index
    %61 = vector.load %arg3[%c8, %c0_46, %c0_47] : memref<9x4x4xf32, #tpu.memory_space<vmem>>, vector<1x4x4xf32>
    %62 = vector.shape_cast %61 : vector<1x4x4xf32> to vector<4x4xf32>
    %cst_48 = arith.constant dense<0.000000e+00> : vector<4x384xf32>
    %63 = tpu.matmul %62, %60, %cst_48 {dimension_numbers = #tpu.dot_dimension_numbers<[1], [0], [0], [1], [0, 0, 1, 1], [], []>} : vector<4x4xf32>, vector<4x384xf32>, vector<4x384xf32> -> vector<4x384xf32>
    %64 = arith.addf %59, %63 : vector<4x384xf32>
    %65 = arith.mulf %64, %1 : vector<4x384xf32>
    %cst_49 = arith.constant dense<0.000000e+00> : vector<4xf32>
    %66 = vector.multi_reduction <add>, %65, %cst_49 [1] : vector<4x384xf32> to vector<4xf32>
    %67 = vector.shape_cast %66 : vector<4xf32> to vector<4x1xf32>
    %68 = arith.mulf %65, %64 : vector<4x384xf32>
    %cst_50 = arith.constant dense<0.000000e+00> : vector<4xf32>
    %69 = vector.multi_reduction <add>, %68, %cst_50 [1] : vector<4x384xf32> to vector<4xf32>
    %70 = vector.shape_cast %69 : vector<4xf32> to vector<4x1xf32>
    %cst_51 = arith.constant 3.906250e-03 : f32
    %71 = vector.broadcast %cst_51 : f32 to vector<4x1xf32>
    %72 = arith.mulf %67, %71 : vector<4x1xf32>
    %cst_52 = arith.constant 3.906250e-03 : f32
    %73 = vector.broadcast %cst_52 : f32 to vector<4x1xf32>
    %74 = arith.mulf %70, %73 : vector<4x1xf32>
    %75 = arith.mulf %72, %72 : vector<4x1xf32>
    %76 = arith.subf %74, %75 : vector<4x1xf32>
    %77 = vector.broadcast %72 : vector<4x1xf32> to vector<4x384xf32>
    %78 = arith.subf %64, %77 : vector<4x384xf32>
    %cst_53 = arith.constant 9.99999974E-6 : f32
    %79 = vector.broadcast %cst_53 : f32 to vector<4x1xf32>
    %80 = arith.addf %76, %79 : vector<4x1xf32>
    %81 = math.rsqrt %80 : vector<4x1xf32>
    %82 = vector.broadcast %81 : vector<4x1xf32> to vector<4x384xf32>
    %83 = arith.mulf %78, %82 : vector<4x384xf32>
    %cst_54 = arith.constant 0.000000e+00 : f32
    %84 = vector.broadcast %cst_54 : f32 to vector<4x384xf32>
    %85 = arith.maximumf %83, %84 : vector<4x384xf32>
    %c348_i32 = arith.constant 348 : i32
    %86 = tpu.dynamic_rotate %85 by %c348_i32 dim 1 : vector<4x384xf32>, i32 -> vector<4x384xf32>
    %87 = arith.select %5, %86, %85 : vector<4x384xi1>, vector<4x384xf32>
    %c36_i32 = arith.constant 36 : i32
    %88 = tpu.dynamic_rotate %87 by %c36_i32 dim 1 : vector<4x384xf32>, i32 -> vector<4x384xf32>
    %89 = arith.select %9, %88, %87 : vector<4x384xi1>, vector<4x384xf32>
    %c382_i32 = arith.constant 382 : i32
    %90 = tpu.dynamic_rotate %89 by %c382_i32 dim 1 : vector<4x384xf32>, i32 -> vector<4x384xf32>
    %91 = arith.select %13, %90, %89 : vector<4x384xi1>, vector<4x384xf32>
    %c2_i32 = arith.constant 2 : i32
    %92 = tpu.dynamic_rotate %91 by %c2_i32 dim 1 : vector<4x384xf32>, i32 -> vector<4x384xf32>
    %93 = arith.select %17, %92, %91 : vector<4x384xi1>, vector<4x384xf32>
    %cst_55 = arith.constant 0.000000e+00 : f32
    %94 = vector.broadcast %cst_55 : f32 to vector<4x384xf32>
    %c19_i32_56 = arith.constant 19 : i32
    %95 = tpu.dynamic_rotate %93 by %c19_i32_56 dim 1 : vector<4x384xf32>, i32 -> vector<4x384xf32>
    %c0_57 = arith.constant 0 : index
    %c0_58 = arith.constant 0 : index
    %c0_59 = arith.constant 0 : index
    %96 = vector.load %arg4[%c0_57, %c0_58, %c0_59] : memref<9x4x4xf32, #tpu.memory_space<vmem>>, vector<1x4x4xf32>
    %97 = vector.shape_cast %96 : vector<1x4x4xf32> to vector<4x4xf32>
    %cst_60 = arith.constant dense<0.000000e+00> : vector<4x384xf32>
    %98 = tpu.matmul %97, %95, %cst_60 {dimension_numbers = #tpu.dot_dimension_numbers<[1], [0], [0], [1], [0, 0, 1, 1], [], []>} : vector<4x4xf32>, vector<4x384xf32>, vector<4x384xf32> -> vector<4x384xf32>
    %99 = arith.addf %94, %98 : vector<4x384xf32>
    %c18_i32_61 = arith.constant 18 : i32
    %100 = tpu.dynamic_rotate %93 by %c18_i32_61 dim 1 : vector<4x384xf32>, i32 -> vector<4x384xf32>
    %c1_62 = arith.constant 1 : index
    %c0_63 = arith.constant 0 : index
    %c0_64 = arith.constant 0 : index
    %101 = vector.load %arg4[%c1_62, %c0_63, %c0_64] : memref<9x4x4xf32, #tpu.memory_space<vmem>>, vector<1x4x4xf32>
    %102 = vector.shape_cast %101 : vector<1x4x4xf32> to vector<4x4xf32>
    %cst_65 = arith.constant dense<0.000000e+00> : vector<4x384xf32>
    %103 = tpu.matmul %102, %100, %cst_65 {dimension_numbers = #tpu.dot_dimension_numbers<[1], [0], [0], [1], [0, 0, 1, 1], [], []>} : vector<4x4xf32>, vector<4x384xf32>, vector<4x384xf32> -> vector<4x384xf32>
    %104 = arith.addf %99, %103 : vector<4x384xf32>
    %c17_i32_66 = arith.constant 17 : i32
    %105 = tpu.dynamic_rotate %93 by %c17_i32_66 dim 1 : vector<4x384xf32>, i32 -> vector<4x384xf32>
    %c2_67 = arith.constant 2 : index
    %c0_68 = arith.constant 0 : index
    %c0_69 = arith.constant 0 : index
    %106 = vector.load %arg4[%c2_67, %c0_68, %c0_69] : memref<9x4x4xf32, #tpu.memory_space<vmem>>, vector<1x4x4xf32>
    %107 = vector.shape_cast %106 : vector<1x4x4xf32> to vector<4x4xf32>
    %cst_70 = arith.constant dense<0.000000e+00> : vector<4x384xf32>
    %108 = tpu.matmul %107, %105, %cst_70 {dimension_numbers = #tpu.dot_dimension_numbers<[1], [0], [0], [1], [0, 0, 1, 1], [], []>} : vector<4x4xf32>, vector<4x384xf32>, vector<4x384xf32> -> vector<4x384xf32>
    %109 = arith.addf %104, %108 : vector<4x384xf32>
    %c1_i32_71 = arith.constant 1 : i32
    %110 = tpu.dynamic_rotate %93 by %c1_i32_71 dim 1 : vector<4x384xf32>, i32 -> vector<4x384xf32>
    %c3_72 = arith.constant 3 : index
    %c0_73 = arith.constant 0 : index
    %c0_74 = arith.constant 0 : index
    %111 = vector.load %arg4[%c3_72, %c0_73, %c0_74] : memref<9x4x4xf32, #tpu.memory_space<vmem>>, vector<1x4x4xf32>
    %112 = vector.shape_cast %111 : vector<1x4x4xf32> to vector<4x4xf32>
    %cst_75 = arith.constant dense<0.000000e+00> : vector<4x384xf32>
    %113 = tpu.matmul %112, %110, %cst_75 {dimension_numbers = #tpu.dot_dimension_numbers<[1], [0], [0], [1], [0, 0, 1, 1], [], []>} : vector<4x4xf32>, vector<4x384xf32>, vector<4x384xf32> -> vector<4x384xf32>
    %114 = arith.addf %109, %113 : vector<4x384xf32>
    %c4_76 = arith.constant 4 : index
    %c0_77 = arith.constant 0 : index
    %c0_78 = arith.constant 0 : index
    %115 = vector.load %arg4[%c4_76, %c0_77, %c0_78] : memref<9x4x4xf32, #tpu.memory_space<vmem>>, vector<1x4x4xf32>
    %116 = vector.shape_cast %115 : vector<1x4x4xf32> to vector<4x4xf32>
    %cst_79 = arith.constant dense<0.000000e+00> : vector<4x384xf32>
    %117 = tpu.matmul %116, %93, %cst_79 {dimension_numbers = #tpu.dot_dimension_numbers<[1], [0], [0], [1], [0, 0, 1, 1], [], []>} : vector<4x4xf32>, vector<4x384xf32>, vector<4x384xf32> -> vector<4x384xf32>
    %118 = arith.addf %114, %117 : vector<4x384xf32>
    %c383_i32_80 = arith.constant 383 : i32
    %119 = tpu.dynamic_rotate %93 by %c383_i32_80 dim 1 : vector<4x384xf32>, i32 -> vector<4x384xf32>
    %c5_81 = arith.constant 5 : index
    %c0_82 = arith.constant 0 : index
    %c0_83 = arith.constant 0 : index
    %120 = vector.load %arg4[%c5_81, %c0_82, %c0_83] : memref<9x4x4xf32, #tpu.memory_space<vmem>>, vector<1x4x4xf32>
    %121 = vector.shape_cast %120 : vector<1x4x4xf32> to vector<4x4xf32>
    %cst_84 = arith.constant dense<0.000000e+00> : vector<4x384xf32>
    %122 = tpu.matmul %121, %119, %cst_84 {dimension_numbers = #tpu.dot_dimension_numbers<[1], [0], [0], [1], [0, 0, 1, 1], [], []>} : vector<4x4xf32>, vector<4x384xf32>, vector<4x384xf32> -> vector<4x384xf32>
    %123 = arith.addf %118, %122 : vector<4x384xf32>
    %c367_i32_85 = arith.constant 367 : i32
    %124 = tpu.dynamic_rotate %93 by %c367_i32_85 dim 1 : vector<4x384xf32>, i32 -> vector<4x384xf32>
    %c6_86 = arith.constant 6 : index
    %c0_87 = arith.constant 0 : index
    %c0_88 = arith.constant 0 : index
    %125 = vector.load %arg4[%c6_86, %c0_87, %c0_88] : memref<9x4x4xf32, #tpu.memory_space<vmem>>, vector<1x4x4xf32>
    %126 = vector.shape_cast %125 : vector<1x4x4xf32> to vector<4x4xf32>
    %cst_89 = arith.constant dense<0.000000e+00> : vector<4x384xf32>
    %127 = tpu.matmul %126, %124, %cst_89 {dimension_numbers = #tpu.dot_dimension_numbers<[1], [0], [0], [1], [0, 0, 1, 1], [], []>} : vector<4x4xf32>, vector<4x384xf32>, vector<4x384xf32> -> vector<4x384xf32>
    %128 = arith.addf %123, %127 : vector<4x384xf32>
    %c366_i32_90 = arith.constant 366 : i32
    %129 = tpu.dynamic_rotate %93 by %c366_i32_90 dim 1 : vector<4x384xf32>, i32 -> vector<4x384xf32>
    %c7_91 = arith.constant 7 : index
    %c0_92 = arith.constant 0 : index
    %c0_93 = arith.constant 0 : index
    %130 = vector.load %arg4[%c7_91, %c0_92, %c0_93] : memref<9x4x4xf32, #tpu.memory_space<vmem>>, vector<1x4x4xf32>
    %131 = vector.shape_cast %130 : vector<1x4x4xf32> to vector<4x4xf32>
    %cst_94 = arith.constant dense<0.000000e+00> : vector<4x384xf32>
    %132 = tpu.matmul %131, %129, %cst_94 {dimension_numbers = #tpu.dot_dimension_numbers<[1], [0], [0], [1], [0, 0, 1, 1], [], []>} : vector<4x4xf32>, vector<4x384xf32>, vector<4x384xf32> -> vector<4x384xf32>
    %133 = arith.addf %128, %132 : vector<4x384xf32>
    %c365_i32_95 = arith.constant 365 : i32
    %134 = tpu.dynamic_rotate %93 by %c365_i32_95 dim 1 : vector<4x384xf32>, i32 -> vector<4x384xf32>
    %c8_96 = arith.constant 8 : index
    %c0_97 = arith.constant 0 : index
    %c0_98 = arith.constant 0 : index
    %135 = vector.load %arg4[%c8_96, %c0_97, %c0_98] : memref<9x4x4xf32, #tpu.memory_space<vmem>>, vector<1x4x4xf32>
    %136 = vector.shape_cast %135 : vector<1x4x4xf32> to vector<4x4xf32>
    %cst_99 = arith.constant dense<0.000000e+00> : vector<4x384xf32>
    %137 = tpu.matmul %136, %134, %cst_99 {dimension_numbers = #tpu.dot_dimension_numbers<[1], [0], [0], [1], [0, 0, 1, 1], [], []>} : vector<4x4xf32>, vector<4x384xf32>, vector<4x384xf32> -> vector<4x384xf32>
    %138 = arith.addf %133, %137 : vector<4x384xf32>
    %139 = arith.mulf %138, %1 : vector<4x384xf32>
    %cst_100 = arith.constant dense<0.000000e+00> : vector<4xf32>
    %140 = vector.multi_reduction <add>, %139, %cst_100 [1] : vector<4x384xf32> to vector<4xf32>
    %141 = vector.shape_cast %140 : vector<4xf32> to vector<4x1xf32>
    %142 = arith.mulf %139, %138 : vector<4x384xf32>
    %cst_101 = arith.constant dense<0.000000e+00> : vector<4xf32>
    %143 = vector.multi_reduction <add>, %142, %cst_101 [1] : vector<4x384xf32> to vector<4xf32>
    %144 = vector.shape_cast %143 : vector<4xf32> to vector<4x1xf32>
    %cst_102 = arith.constant 3.906250e-03 : f32
    %145 = vector.broadcast %cst_102 : f32 to vector<4x1xf32>
    %146 = arith.mulf %141, %145 : vector<4x1xf32>
    %cst_103 = arith.constant 3.906250e-03 : f32
    %147 = vector.broadcast %cst_103 : f32 to vector<4x1xf32>
    %148 = arith.mulf %144, %147 : vector<4x1xf32>
    %149 = arith.mulf %146, %146 : vector<4x1xf32>
    %150 = arith.subf %148, %149 : vector<4x1xf32>
    %151 = vector.broadcast %146 : vector<4x1xf32> to vector<4x384xf32>
    %152 = arith.subf %138, %151 : vector<4x384xf32>
    %cst_104 = arith.constant 9.99999974E-6 : f32
    %153 = vector.broadcast %cst_104 : f32 to vector<4x1xf32>
    %154 = arith.addf %150, %153 : vector<4x1xf32>
    %155 = math.rsqrt %154 : vector<4x1xf32>
    %156 = vector.broadcast %155 : vector<4x1xf32> to vector<4x384xf32>
    %157 = arith.mulf %152, %156 : vector<4x384xf32>
    %158 = arith.addf %157, %19 : vector<4x384xf32>
    %c0_105 = arith.constant 0 : index
    %c0_106 = arith.constant 0 : index
    %c0_107 = arith.constant 0 : index
    %159 = vector.load %arg5[%c0_105, %c0_106, %c0_107] : memref<1x4x384xf32, #tpu.memory_space<vmem>>, vector<1x4x384xf32>
    %160 = vector.shape_cast %159 : vector<1x4x384xf32> to vector<4x384xf32>
    %161 = vector.shape_cast %158 : vector<4x384xf32> to vector<1x4x384xf32>
    tpu.vector_store %arg5[%c0_105, %c0_106, %c0_107], %161 {strides = array<i32>} : memref<1x4x384xf32, #tpu.memory_space<vmem>>, vector<1x4x384xf32>,
    return
  }
  func.func @transform_0(%arg0: i32) -> (i32, i32, i32) {
    %c0_i32 = arith.constant 0 : i32
    %c0_i32_0 = arith.constant 0 : i32
    %c0_i32_1 = arith.constant 0 : i32
    %c0_i32_2 = arith.constant 0 : i32
    return %c0_i32, %c0_i32_0, %c0_i32_1 : i32, i32, i32
  }
  func.func @transform_1(%arg0: i32) -> (i32, i32, i32) {
    %c0_i32 = arith.constant 0 : i32
    %c0_i32_0 = arith.constant 0 : i32
    %c0_i32_1 = arith.constant 0 : i32
    return %arg0, %c0_i32, %c0_i32_0 : i32, i32, i32
  }
  func.func @transform_2(%arg0: i32) -> (i32, i32, i32) {
    %c0_i32 = arith.constant 0 : i32
    %c0_i32_0 = arith.constant 0 : i32
    %c0_i32_1 = arith.constant 0 : i32
    %c0_i32_2 = arith.constant 0 : i32
    return %c0_i32, %c0_i32_0, %c0_i32_1 : i32, i32, i32
  }
  func.func @transform_3(%arg0: i32) -> (i32, i32, i32) {
    %c0_i32 = arith.constant 0 : i32
    %c0_i32_0 = arith.constant 0 : i32
    %c0_i32_1 = arith.constant 0 : i32
    %c0_i32_2 = arith.constant 0 : i32
    return %c0_i32, %c0_i32_0, %c0_i32_1 : i32, i32, i32
  }
  func.func @transform_4(%arg0: i32) -> (i32, i32, i32) {
    %c0_i32 = arith.constant 0 : i32
    %c0_i32_0 = arith.constant 0 : i32
    %c0_i32_1 = arith.constant 0 : i32
    return %arg0, %c0_i32, %c0_i32_0 : i32, i32, i32
  }
}

</mosaic_0001>

<bundles_post_ra>
// kernel: residual_block_nchw.1
= control target key start
LH: loop header
LB: loop body
LE: loop exit
PB: predicated region body
PF: predicated region fallthrough
CT: control target
= control target key end

     0   :  { %s3748_s15 = smov 0   ;;  %s4279_s0 = inlined_call_operand.vmem [shape: f32[5,4,384], index: 0, kind: input, shape index: {}]   ;;  %s4280_s1 = inlined_call_operand.vmem [shape: f32[2,4,384], index: 1, kind: input, shape index: {}]   ;;  %s4281_s2 = inlined_call_operand.vmem [shape: f32[9,4,4], index: 2, kind: input, shape index: {}]   ;;  %s4282_s3 = inlined_call_operand.vmem [shape: f32[9,4,4], index: 3, kind: input, shape index: {}]   ;;  %s4283_s4 = inlined_call_operand.vmem [shape: f32[2,4,384], index: 4, kind: output, shape index: {}]  }
   0x1 LB: > { %s3421_s16 = sadd.s32 4294967295, %s3707_s15   ;;  %p3425_p0 = scmp.ge.s32.totalorder %s3707_s15, 1  ;;  %s3707_s15 = sphi %s3748_s15, %s14_s15  }
   0x2   : > { %p162_p1 = scmp.lt.s32.totalorder %s3707_s15, 3 }
   0x4   : > { %p163_p2 = pnand %p3425_p0, %p162_p1 }
   0x5   : > { %p188_p3 = scmp.lt.s32.totalorder (!%p163_p2), %s3421_s16, 1  ;;  %s3711_s21 = smov (!%p163_p2), 18  }
   0x6   : > { %166 = sbr.rel (%p163_p2) target bundleno = 1569 (0x621), region = 36  ;;  %s3712_s22 = smov (!%p163_p2), 19  }
   0x7   : > { %s3713_s23 = smov (!%p163_p2), 17   ;;  %s3714_s24 = smov (!%p163_p2), 1  }
   0x8   : > { %s3715_s25 = smov (!%p163_p2), 127   ;;  %s3716_s26 = smov (!%p163_p2), 111  }
   0x9   : > { %s3717_s27 = smov (!%p163_p2), 110   ;;  %s3718_s28 = smov (!%p163_p2), 109  }
   0xa   : > { %s3719_s11 = smov (!%p163_p2), 92   ;;  %s3720_s19 = smov (!%p163_p2), 36  }
   0xb   : > { %v3709_v0 = vmov 0.0   ;;  %s4285_s16 = smov (!%p188_p3, %s3421_s16), 1  ;;  %vm3710_vm0 = vmmov 0   ;;  %v232_v4 = vlaneseq  ;;  %vm255_vm2 = vcmask 1043456   ;;  %v3436_v12 = vld [vmem:[%s4281_s2 + $0x4] sm:$0xf] }
   0xc   : > { %3580 = vmatprep.subr.mxu1 %v3709_v0  ;;  %329 = vmatprep.mubr.f32.mxu0 %v3709_v0  ;;  %s3670_s17 = smul.u32 12, %s4285_s16  ;;  %vm251_vm3 = vcmask 31744   ;;  %v238_v19 = vld [vmem:[%s4281_s2] sm:$0xf]  ;;  %v3447_v25 = vld [vmem:[%s4281_s2 + $0x8] sm:$0xf] }
   0xd   : > { %3582 = vmatprep.mubr.msk.f32.mxu1 %vm3710_vm0, %v3709_v0  ;;  %v3828_v5 = vand.u32 127, %v232_v4  ;;  %v3453_v30 = vld [vmem:[%s4281_s2 + $0xc] sm:$0xf]  ;;  %v3459_v37 = vld [vmem:[%s4281_s2 + $0x10] sm:$0xf]  ;;  %s3721_s7 = smov 126  }
   0xe   : > { %s3768_s20 = scalar_lea.vmem %s4280_s1, %s3670_s17  ;;  %v3465_v42 = vld [vmem:[%s4281_s2 + $0x14] sm:$0xf]  ;;  %v3471_v48 = vld [vmem:[%s4281_s2 + $0x18] sm:$0xf]  ;;  %v3477_v54 = vld [vmem:[%s4281_s2 + $0x1c] sm:$0xf]  ;;  %s197_s18 = scalar_lea.vmem %s4283_s4, %s3670_s17 }
   0xf   : > { %v3771_v1 = vld [vmem:[%s3768_s20 + $0x8] sm:$0xf]  ;;  %v3774_v2 = vld [vmem:[%s3768_s20] sm:$0xff]  ;;  %vm245_vm1 = vcmp.lt.s32.totalorder %v3828_v5, 18  ;;  %vm234_vm4 = vcmp.lt.s32.totalorder %v3828_v5, 19  ;;  %vm565_vm5 = vcmp.lt.s32.totalorder %v3828_v5, 17 }
  0x10   : > { %243 = vrot.lane.b32.xlu1 %v3771_v1, %s3711_s21  ;;  %239 = vrot.lane.b32.xlu0 %v3774_v2, %s3711_s21  ;;  %v3782_v3 = vcombine.high %v3774_v2, %v3774_v2  ;;  %vm733_vm6 = vcmp.lt.s32.totalorder %v3828_v5, 1  ;;  %vm1056_vm7 = vcmp.lt.s32.totalorder %v3828_v5, 127  ;;  %vm1224_vm8 = vcmp.lt.s32.totalorder %v3828_v5, 111  ;;  %v3483_v59 = vld [vmem:[%s4281_s2 + $0x20] sm:$0xf]  ;;  %s3722_s12 = smov 2  }
  0x11   : > { %vm1392_vm9 = vcmp.lt.s32.totalorder %v3828_v5, 110  ;;  %vm1560_vm10 = vcmp.lt.s32.totalorder %v3828_v5, 109  ;;  %vm1766_vm11 = vcmp.lt.s32.totalorder %v3828_v5, 92  ;;  %vm1789_vm14 = vcmp.lt.s32.totalorder %v3828_v5, 36 }
  0x14   : > { %226 = vrot.lane.b32.xlu1 %v3774_v2, %s3712_s22  ;;  %241 = vrot.lane.b32.xlu0 %v3782_v3, %s3711_s21 }
  0x18   : > { %230 = vrot.lane.b32.xlu1 %v3771_v1, %s3712_s22  ;;  %228 = vrot.lane.b32.xlu0 %v3782_v3, %s3712_s22 }
  0x1c   : > { %561 = vrot.lane.b32.xlu1 %v3782_v3, %s3713_s23  ;;  %559 = vrot.lane.b32.xlu0 %v3774_v2, %s3713_s23 }
  0x20   : > { %727 = vrot.lane.b32.xlu1 %v3774_v2, %s3714_s24  ;;  %563 = vrot.lane.b32.xlu0 %v3771_v1, %s3713_s23 }
  0x24   : > { %731 = vrot.lane.b32.xlu1 %v3771_v1, %s3714_s24  ;;  %729 = vrot.lane.b32.xlu0 %v3782_v3, %s3714_s24 }
  0x28   : > { %1054 = vrot.lane.b32.xlu1 %v3771_v1, %s3715_s25  ;;  %1052 = vrot.lane.b32.xlu0 %v3782_v3, %s3715_s25 }
  0x2c   : > { %1220 = vrot.lane.b32.xlu1 %v3782_v3, %s3716_s26  ;;  %1050 = vrot.lane.b32.xlu0 %v3774_v2, %s3715_s25 }
  0x30   : > { %1218 = vrot.lane.b32.xlu1 %v3774_v2, %s3716_s26  ;;  %1222 = vrot.lane.b32.xlu0 %v3771_v1, %s3716_s26 }
  0x34   : > { %1390 = vrot.lane.b32.xlu1 %v3771_v1, %s3717_s27  ;;  %1388 = vrot.lane.b32.xlu0 %v3782_v3, %s3717_s27 }
  0x38   : > { %1556 = vrot.lane.b32.xlu1 %v3782_v3, %s3718_s28  ;;  %1386 = vrot.lane.b32.xlu0 %v3774_v2, %s3717_s27 }
  0x3c   : > { %1554 = vrot.lane.b32.xlu1 %v3774_v2, %s3718_s28  ;;  %1558 = vrot.lane.b32.xlu0 %v3771_v1, %s3718_s28 }
  0x82   : > { %v244_v6 = vpop.permute.xlu1 %243  ;;  %v240_v7 = vpop.permute.xlu0 %239 }
  0x83   : > { %v248_v13 = vsel %vm245_vm1, %v244_v6, %v240_v7 }
  0x86   : > { %v227_v8 = vpop.permute.xlu1 %226  ;;  %v242_v9 = vpop.permute.xlu0 %241 }
  0x87   : > { %v247_v10 = vsel %vm245_vm1, %v240_v7, %v242_v9  ;;  %v246_v11 = vsel %vm245_vm1, %v242_v9, %v244_v6 }
  0x88   : > { %3437 = vmatprep.subr.msk.mxu0 %vm255_vm2, %v247_v10  ;;  %3581 = vmatpush3.msk.msra.mxu1 %vm255_vm2, %v246_v11 }
  0x89   : > { %3438 = vmatpush1.msk.msra.mxu0 %vm255_vm2, %v248_v13  ;;  %3585 = vmatprep.subr.mxu1 %v3709_v0 }
  0x8a   : > { %v231_v14 = vpop.permute.xlu1 %230  ;;  %v229_v15 = vpop.permute.xlu0 %228  ;;  %3439 = vmatmul.mubr.msk.f32.vlgmr.msra.gmra.mxu0 %vm251_vm3, %v3436_v12  ;;  %3583 = vmatmul.mubr.msk.f32.vlgmr.msra.gmra.mxu1 %vm251_vm3, %v3436_v12 }
  0x8b   : > { %v237_v16 = vsel %vm234_vm4, %v231_v14, %v227_v8  ;;  %v235_v17 = vsel %vm234_vm4, %v229_v15, %v231_v14  ;;  %v236_v18 = vsel %vm234_vm4, %v227_v8, %v229_v15  ;;  %482 = vmatprep.mubr.f32.mxu0 %v3709_v0  ;;  %3587 = vmatprep.mubr.msk.f32.mxu1 %vm3710_vm0, %v3709_v0 }
  0x8c   : > { %3442 = vmatprep.subr.msk.mxu0 %vm255_vm2, %v236_v18  ;;  %3586 = vmatpush3.msk.msra.mxu1 %vm255_vm2, %v235_v17 }
  0x8d   : > { %3443 = vmatpush1.msk.msra.mxu0 %vm255_vm2, %v237_v16  ;;  %3590 = vmatprep.subr.mxu1 %v3709_v0 }
  0x8e   : > { %v562_v20 = vpop.permute.xlu1 %561  ;;  %v560_v21 = vpop.permute.xlu0 %559  ;;  %3444 = vmatmul.mubr.msk.f32.vlgmr.msra.gmra.mxu0 %vm251_vm3, %v238_v19  ;;  %3588 = vmatmul.mubr.msk.f32.vlgmr.msra.gmra.mxu1 %vm251_vm3, %v238_v19 }
  0x8f   : > { %v567_v22 = vsel %vm565_vm5, %v560_v21, %v562_v20  ;;  %647 = vmatprep.mubr.f32.mxu0 %v3709_v0  ;;  %3592 = vmatprep.mubr.msk.f32.mxu1 %vm3710_vm0, %v3709_v0 }
  0x90   : > { %3448 = vmatprep.subr.msk.mxu0 %vm255_vm2, %v567_v22 }
  0x92   : > { %v728_v23 = vpop.permute.xlu1 %727  ;;  %v564_v24 = vpop.permute.xlu0 %563 }
  0x93   : > { %v566_v26 = vsel %vm565_vm5, %v562_v20, %v564_v24  ;;  %v568_v27 = vsel %vm565_vm5, %v564_v24, %v560_v21 }
  0x94   : > { %3449 = vmatpush1.msk.msra.mxu0 %vm255_vm2, %v568_v27  ;;  %3591 = vmatpush3.msk.msra.mxu1 %vm255_vm2, %v566_v26 }
  0x95   : > { %3450 = vmatmul.mubr.msk.f32.vlgmr.msra.gmra.mxu0 %vm251_vm3, %v3447_v25  ;;  %3593 = vmatmul.mubr.msk.f32.vlgmr.msra.gmra.mxu1 %vm251_vm3, %v3447_v25 }
  0x96   : > { %v732_v28 = vpop.permute.xlu1 %731  ;;  %v730_v29 = vpop.permute.xlu0 %729  ;;  %3595 = vmatprep.subr.mxu1 %v3709_v0  ;;  %3597 = vmatprep.mubr.msk.f32.mxu1 %vm3710_vm0, %v3709_v0 }
  0x97   : > { %v736_v31 = vsel %vm733_vm6, %v732_v28, %v728_v23  ;;  %v734_v32 = vsel %vm733_vm6, %v730_v29, %v732_v28  ;;  %v735_v33 = vsel %vm733_vm6, %v728_v23, %v730_v29  ;;  %815 = vmatprep.mubr.f32.mxu0 %v3709_v0 }
  0x98   : > { %3454 = vmatprep.subr.msk.mxu0 %vm255_vm2, %v735_v33  ;;  %3596 = vmatpush3.msk.msra.mxu1 %vm255_vm2, %v734_v32 }
  0x99   : > { %3455 = vmatpush1.msk.msra.mxu0 %vm255_vm2, %v736_v31  ;;  %3598 = vmatmul.mubr.msk.f32.vlgmr.msra.gmra.mxu1 %vm251_vm3, %v3453_v30 }
  0x9a   : > { %v1055_v34 = vpop.permute.xlu1 %1054  ;;  %3456 = vmatmul.mubr.msk.f32.vlgmr.msra.gmra.mxu0 %vm251_vm3, %v3453_v30  ;;  %3460 = vmatprep.subr.msk.mxu0 %vm255_vm2, %v3782_v3  ;;  %v1053_v35 = vpop.permute.xlu0 %1052 }
  0x9b   : > { %v1057_v36 = vsel %vm1056_vm7, %v1053_v35, %v1055_v34  ;;  %3461 = vmatpush1.msk.msra.mxu0 %vm255_vm2, %v3774_v2  ;;  %3600 = vmatprep.subr.mxu1 %v3709_v0 }
  0x9c   : > { %3601 = vmatpush3.msk.msra.mxu1 %vm255_vm2, %v3771_v1  ;;  %3602 = vmatprep.mubr.msk.f32.mxu1 %vm3710_vm0, %v3709_v0 }
  0x9d   : > { %3466 = vmatprep.subr.msk.mxu0 %vm255_vm2, %v1057_v36  ;;  %970 = vmatprep.mubr.f32.mxu0 %v3709_v0 }
  0x9e   : > { %3603 = vmatmul.mubr.msk.f32.vlgmr.msra.gmra.mxu1 %vm251_vm3, %v3459_v37  ;;  %v1221_v38 = vpop.permute.xlu1 %1220  ;;  %3462 = vmatmul.mubr.msk.f32.vlgmr.msra.gmra.mxu0 %vm251_vm3, %v3459_v37  ;;  %v1051_v39 = vpop.permute.xlu0 %1050 }
  0x9f   : > { %v1058_v40 = vsel %vm1056_vm7, %v1051_v39, %v1053_v35  ;;  %v1059_v41 = vsel %vm1056_vm7, %v1055_v34, %v1051_v39  ;;  %3605 = vmatprep.subr.mxu1 %v3709_v0  ;;  %3607 = vmatprep.mubr.msk.f32.mxu1 %vm3710_vm0, %v3709_v0 }
  0xa0   : > { %3467 = vmatpush1.msk.msra.mxu0 %vm255_vm2, %v1058_v40  ;;  %3606 = vmatpush3.msk.msra.mxu1 %vm255_vm2, %v1059_v41 }
  0xa1   : > { %1138 = vmatprep.mubr.f32.mxu0 %v3709_v0  ;;  %3610 = vmatprep.subr.mxu1 %v3709_v0 }
  0xa2   : > { %3608 = vmatmul.mubr.msk.f32.vlgmr.msra.gmra.mxu1 %vm251_vm3, %v3465_v42  ;;  %v1219_v43 = vpop.permute.xlu1 %1218  ;;  %3468 = vmatmul.mubr.msk.f32.vlgmr.msra.gmra.mxu0 %vm251_vm3, %v3465_v42  ;;  %v1223_v44 = vpop.permute.xlu0 %1222 }
  0xa3   : > { %v1226_v45 = vsel %vm1224_vm8, %v1219_v43, %v1221_v38  ;;  %v1225_v46 = vsel %vm1224_vm8, %v1221_v38, %v1223_v44  ;;  %v1227_v47 = vsel %vm1224_vm8, %v1223_v44, %v1219_v43  ;;  %3612 = vmatprep.mubr.msk.f32.mxu1 %vm3710_vm0, %v3709_v0  ;;  %1306 = vmatprep.mubr.f32.mxu0 %v3709_v0 }
  0xa4   : > { %3472 = vmatprep.subr.msk.mxu0 %vm255_vm2, %v1225_v46  ;;  %3611 = vmatpush3.msk.msra.mxu1 %vm255_vm2, %v1227_v47 }
  0xa5   : > { %3473 = vmatpush1.msk.msra.mxu0 %vm255_vm2, %v1226_v45  ;;  %3615 = vmatprep.subr.mxu1 %v3709_v0 }
  0xa6   : > { %3613 = vmatmul.mubr.msk.f32.vlgmr.msra.gmra.mxu1 %vm251_vm3, %v3471_v48  ;;  %v1391_v49 = vpop.permute.xlu1 %1390  ;;  %3474 = vmatmul.mubr.msk.f32.vlgmr.msra.gmra.mxu0 %vm251_vm3, %v3471_v48  ;;  %v1389_v50 = vpop.permute.xlu0 %1388 }
  0xa7   : > { %v1393_v51 = vsel %vm1392_vm9, %v1389_v50, %v1391_v49  ;;  %1474 = vmatprep.mubr.f32.mxu0 %v3709_v0  ;;  %3617 = vmatprep.mubr.msk.f32.mxu1 %vm3710_vm0, %v3709_v0 }
  0xa8   : > { %3478 = vmatprep.subr.msk.mxu0 %vm255_vm2, %v1393_v51 }
  0xaa   : > { %v1557_v52 = vpop.permute.xlu1 %1556  ;;  %v1387_v53 = vpop.permute.xlu0 %1386 }
  0xab   : > { %v1394_v55 = vsel %vm1392_vm9, %v1387_v53, %v1389_v50  ;;  %v1395_v56 = vsel %vm1392_vm9, %v1391_v49, %v1387_v53 }
  0xac   : > { %3479 = vmatpush1.msk.msra.mxu0 %vm255_vm2, %v1394_v55  ;;  %3616 = vmatpush3.msk.msra.mxu1 %vm255_vm2, %v1395_v56 }
  0xad   : > { %3480 = vmatmul.mubr.msk.f32.vlgmr.msra.gmra.mxu0 %vm251_vm3, %v3477_v54  ;;  %3618 = vmatmul.mubr.msk.f32.vlgmr.msra.gmra.mxu1 %vm251_vm3, %v3477_v54 }
  0xae   : > { %v1555_v57 = vpop.permute.xlu1 %1554  ;;  %v1559_v58 = vpop.permute.xlu0 %1558  ;;  %3620 = vmatprep.subr.mxu1 %v3709_v0  ;;  %3622 = vmatprep.mubr.msk.f32.mxu1 %vm3710_vm0, %v3709_v0 }
  0xaf   : > { %v1562_v60 = vsel %vm1560_vm10, %v1555_v57, %v1557_v52  ;;  %v1561_v61 = vsel %vm1560_vm10, %v1557_v52, %v1559_v58  ;;  %v1563_v62 = vsel %vm1560_vm10, %v1559_v58, %v1555_v57  ;;  %1642 = vmatprep.mubr.f32.mxu0 %v3709_v0  ;;  %v4000_v52 = vld [vmem:[%s4279_s0] sm:$0xff]  ;;  %v4005_v58 = vld [vmem:[%s4279_s0 + $0x8] sm:$0xf] }
  0xb0   : > { %3484 = vmatprep.subr.msk.mxu0 %vm255_vm2, %v1561_v61  ;;  %3621 = vmatpush3.msk.msra.mxu1 %vm255_vm2, %v1563_v62  ;;  %v4009_v61 = vcombine.high %v4000_v52, %v4000_v52 }
  0xb1   : > { %3485 = vmatpush1.msk.msra.mxu0 %vm255_vm2, %v1562_v60  ;;  %3623 = vmatmul.mubr.msk.f32.vlgmr.msra.gmra.mxu1 %vm251_vm3, %v3483_v59 }
  0xb2   : > { %3486 = vmatmul.mubr.msk.f32.vlgmr.msra.gmra.mxu0 %vm251_vm3, %v3483_v59  ;;  %3625 = vmatprep.subr.mxu1 %v3709_v0 }
  0xb3   : > { %3627 = vmatprep.mubr.msk.f32.mxu1 %vm3710_vm0, %v3709_v0  ;;  %1938 = vmatprep.mubr.f32.mxu0 %v3709_v0 }
 0x14a   : > { %v331_v63 = vpop.f32.mrf.mxu0  ;;  %v402_v1 = vpop.f32.mrf.mxu1 }
 0x14c   : > { %v333_v2 = vpop.f32.mrf.mxu0  ;;  %v3584_v4 = vpop.f32.mrf.mxu1 }
 0x14e   : > { %v484_v6 = vpop.f32.mrf.mxu0  ;;  %v555_v7 = vpop.f32.mrf.mxu1 }
 0x14f   : > { %v556_v18 = vadd.f32 %v555_v7, %v402_v1  ;;  %v485_v26 = vadd.f32 %v484_v6, %v331_v63 }
 0x150   : > { %v3589_v8 = vpop.f32.mrf.mxu1  ;;  %v486_v9 = vpop.f32.mrf.mxu0 }
 0x151   : > { %v487_v31 = vadd.f32 %v486_v9, %v333_v2 }
 0x155   : > { %v649_v10 = vpop.f32.mrf.mxu0  ;;  %v720_v11 = vpop.f32.mrf.mxu1 }
 0x156   : > { %v726_v23 = vadd.f32 %v720_v11, %v556_v18  ;;  %v724_v32 = vadd.f32 %v649_v10, %v485_v26 }
 0x157   : > { %v651_v12 = vpop.f32.mrf.mxu0  ;;  %v3594_v13 = vpop.f32.mrf.mxu1 }
 0x158   : > { %v725_v35 = vadd.f32 %v651_v12, %v487_v31 }
 0x159   : > { %v888_v14 = vpop.f32.mrf.mxu1 }
 0x15a   : > { %v817_v15 = vpop.f32.mrf.mxu0  ;;  %v894_v29 = vadd.f32 %v888_v14, %v726_v23 }
 0x15b   : > { %v3599_v16 = vpop.f32.mrf.mxu1  ;;  %v892_v36 = vadd.f32 %v817_v15, %v724_v32 }
 0x15c   : > { %v819_v17 = vpop.f32.mrf.mxu0 }
 0x15d   : > { %v893_v38 = vadd.f32 %v819_v17, %v725_v35 }
 0x15e   : > { %v1043_v19 = vpop.f32.mrf.mxu1  ;;  %v972_v20 = vpop.f32.mrf.mxu0 }
 0x15f   : > { %v1049_v37 = vadd.f32 %v1043_v19, %v894_v29  ;;  %v1047_v39 = vadd.f32 %v972_v20, %v892_v36 }
 0x160   : > { %v3604_v21 = vpop.f32.mrf.mxu1  ;;  %v974_v22 = vpop.f32.mrf.mxu0 }
 0x161   : > { %v1048_v42 = vadd.f32 %v974_v22, %v893_v38 }
 0x162   : > { %v1211_v24 = vpop.f32.mrf.mxu1  ;;  %v1140_v25 = vpop.f32.mrf.mxu0 }
 0x163   : > { %v1217_v41 = vadd.f32 %v1211_v24, %v1049_v37  ;;  %v1215_v43 = vadd.f32 %v1140_v25, %v1047_v39 }
 0x164   : > { %v3609_v27 = vpop.f32.mrf.mxu1  ;;  %v1142_v28 = vpop.f32.mrf.mxu0 }
 0x165   : > { %v1216_v47 = vadd.f32 %v1142_v28, %v1048_v42 }
 0x166   : > { %v1379_v30 = vpop.f32.mrf.mxu1  ;;  %v1308_v33 = vpop.f32.mrf.mxu0 }
 0x167   : > { %v1385_v46 = vadd.f32 %v1379_v30, %v1217_v41  ;;  %v1383_v48 = vadd.f32 %v1308_v33, %v1215_v43 }
 0x168   : > { %v3614_v34 = vpop.f32.mrf.mxu1  ;;  %v1310_v40 = vpop.f32.mrf.mxu0 }
 0x169   : > { %v1384_v53 = vadd.f32 %v1310_v40, %v1216_v47  ;;  %v3428_v40 = vld [vmem:[%s4279_s0 + $0xc] sm:$0xff] }
 0x16a   : > { %vm203_vm12 = vcmp.gt.f32.partialorder %v3428_v40, 0.5 }
 0x16d   : > { %v1476_v44 = vpop.f32.mrf.mxu0  ;;  %v1547_v45 = vpop.f32.mrf.mxu1 }
 0x16e   : > { %v1553_v51 = vadd.f32 %v1547_v45, %v1385_v46  ;;  %v1551_v54 = vadd.f32 %v1476_v44, %v1383_v48  ;;  %v3429_v45 = vld [vmem:[%s4279_s0 + $0x14] sm:$0xf] }
 0x16f   : > { %v1478_v49 = vpop.f32.mrf.mxu0  ;;  %v3619_v50 = vpop.f32.mrf.mxu1  ;;  %vm204_vm13 = vcmp.gt.f32.partialorder %v3429_v45, 0.5 }
 0x170   : > { %v1552_v59 = vadd.f32 %v1478_v49, %v1384_v53  ;;  %v3430_v53 = vld [vmem:[%s4279_s0 + $0x18] sm:$0xff] }
 0x171   : > { %v1715_v55 = vpop.f32.mrf.mxu1  ;;  %vm208_vm15 = vcmp.gt.f32.partialorder %v3430_v53, 0.5 }
 0x172   : > { %v1721_v56 = vadd.f32 %v1715_v55, %v1553_v51  ;;  %v1644_v57 = vpop.f32.mrf.mxu0 }
 0x173   : > { %v1719_v60 = vadd.f32 %v1644_v57, %v1551_v54  ;;  %v3624_v62 = vpop.f32.mrf.mxu1 }
 0x174   : > { %v1646_v63 = vpop.f32.mrf.mxu0  ;;  %v1727_v4 = vmul.f32 %v1721_v56, %v4005_v58 }
 0x175   : > { %v1725_v1 = vmul.f32 %v1719_v60, %v4000_v52  ;;  %v1720_v2 = vadd.f32 %v1646_v63, %v1552_v59  ;;  %v3431_v59 = vld [vmem:[%s4279_s0 + $0x20] sm:$0xf] }
 0x176   : > { %v1737_v11 = vmul.f32 %v1727_v4, %v1721_v56  ;;  %v1731_v13 = vsel %vm255_vm2, %v1727_v4, 0.0 }
 0x177   : > { %v1735_v6 = vmul.f32 %v1725_v1, %v1719_v60  ;;  %v1726_v7 = vmul.f32 %v4009_v61, %v1720_v2  ;;  %v1728_v9 = vsel %vm255_vm2, %v1725_v1, 0.0 }
 0x178   : > { %v1741_v18 = vsel %vm255_vm2, %v1737_v11, 0.0  ;;  %v3433_v11 = vld [vmem:[%s4279_s0 + $0x2c] sm:$0xf] }
 0x179   : > { %v1736_v8 = vmul.f32 %v1726_v7, %v1720_v2  ;;  %v1729_v10 = vsel %vm255_vm2, %v1726_v7, 0.0  ;;  %v1738_v14 = vsel %vm255_vm2, %v1735_v6, 0.0  ;;  %v3432_v6 = vld [vmem:[%s4279_s0 + $0x24] sm:$0xff] }
 0x17a   : > { %v1730_v12 = vadd.f32 %v1729_v10, %v1728_v9 }
 0x17b   : > { %v1739_v15 = vsel %vm255_vm2, %v1736_v8, 0.0 }
 0x17c   : > { %v1732_v16 = vadd.f32 %v1731_v13, %v1730_v12  ;;  %v1740_v17 = vadd.f32 %v1739_v15, %v1738_v14 }
 0x17e   : > { %1733 = vadd.xlane.f32.xlu0 %v1732_v16  ;;  %v1742_v19 = vadd.f32 %v1741_v18, %v1740_v17  ;;  %v3435_v17 = vld [vmem:[%s4279_s0 + $0x38] sm:$0xf] }
 0x180   : > { %1743 = vadd.xlane.f32.xlu1 %v1742_v19  ;;  %v3434_v19 = vld [vmem:[%s4279_s0 + $0x30] sm:$0xff] }
 0x207   : > { %v1734_v20 = vpop.xlane.xlu0 %1733 }
 0x208   : > { %v1745_v21 = vmul.f32 0.00390625, %v1734_v20 }
 0x209   : > { %v1744_v22 = vpop.xlane.xlu1 %1743 }
 0x20a   : > { %v1746_v23 = vmul.f32 0.00390625, %v1744_v22  ;;  %v1747_v24 = vmul.f32 %v1745_v21, %v1745_v21  ;;  %v1750_v27 = vsub.f32 %v1720_v2, %v1745_v21  ;;  %v1749_v28 = vsub.f32 %v1719_v60, %v1745_v21 }
 0x20b   : > { %v1751_v32 = vsub.f32 %v1721_v56, %v1745_v21 }
 0x20c   : > { %v1748_v25 = vsub.f32 %v1746_v23, %v1747_v24 }
 0x20e   : > { %v1752_v26 = vadd.f32 1e-05, %v1748_v25 }
 0x210   : > { %3695 = vrsqrt.f32 %v1752_v26 }
 0x21d   : > { %v3696_v29 = vpop.eup %3695 }
 0x21e   : > { %v1755_v30 = vmul.f32 %v3696_v29, %v1750_v27  ;;  %v1754_v31 = vmul.f32 %v3696_v29, %v1749_v28  ;;  %v1756_v35 = vmul.f32 %v3696_v29, %v1751_v32 }
 0x220   : > { %v1758_v33 = vmax.f32 %v1755_v30, 0.0  ;;  %v1757_v34 = vmax.f32 %v1754_v31, 0.0  ;;  %v1759_v37 = vmax.f32 %v1756_v35, 0.0 }
 0x222   : > { %1762 = vrot.lane.b32.xlu1 %v1758_v33, %s3719_s11  ;;  %1760 = vrot.lane.b32.xlu0 %v1757_v34, %s3719_s11  ;;  %v1776_v36 = vcombine.low %v1757_v34, %v1758_v33  ;;  %v3489_v34 = vld [vmem:[%s4282_s3 + $0x4] sm:$0xf] }
 0x226   : > { %1764 = vrot.lane.b32.xlu0 %v1759_v37, %s3719_s11 }
 0x294   : > { %v1761_v38 = vpop.permute.xlu0 %1760  ;;  %v1763_v39 = vpop.permute.xlu1 %1762 }
 0x295   : > { %v1768_v42 = vsel %vm1766_vm11, %v1761_v38, %v1763_v39 }
 0x298   : > { %v1765_v41 = vpop.permute.xlu0 %1764 }
 0x299   : > { %v1767_v43 = vsel %vm1766_vm11, %v1763_v39, %v1765_v41  ;;  %v1769_v47 = vsel %vm1766_vm11, %v1765_v41, %v1761_v38  ;;  %vm209_vm11 = vcmp.gt.f32.partialorder %v3431_v59, 0.5 }
 0x29a   : > { %v1772_v44 = vcombine.low %v1768_v42, %v1767_v43  ;;  %v1779_v49 = vsel %vm204_vm13, %v1769_v47, %v1759_v37  ;;  %vm213_vm13 = vcmp.gt.f32.partialorder %v3432_v6, 0.5  ;;  %v1850_v42 = vld [vmem:[%s4282_s3] sm:$0xf] }
 0x29c   : > { %v1778_v46 = vsel %vm203_vm12, %v1772_v44, %v1776_v36  ;;  %vm1808_vm12 = vcmp.lt.s32.totalorder %v3828_v5, 126 }
 0x29d   : > { %1783 = vrot.lane.b32.xlu1 %v1778_v46, %s3720_s19  ;;  %v1781_v48 = vcombine.high %v1778_v46, %v1778_v46 }
 0x29f   : > { %1785 = vrot.lane.b32.xlu0 %v1781_v48, %s3720_s19 }
 0x2a1   : > { %1787 = vrot.lane.b32.xlu1 %v1779_v49, %s3720_s19 }
 0x30f   : > { %v1784_v50 = vpop.permute.xlu1 %1783 }
 0x311   : > { %v1786_v51 = vpop.permute.xlu0 %1785 }
 0x312   : > { %v1791_v55 = vsel %vm1789_vm14, %v1784_v50, %v1786_v51 }
 0x313   : > { %v1788_v54 = vpop.permute.xlu1 %1787 }
 0x314   : > { %v1792_v56 = vsel %vm1789_vm14, %v1788_v54, %v1784_v50  ;;  %v1790_v62 = vsel %vm1789_vm14, %v1786_v51, %v1788_v54  ;;  %vm214_vm14 = vcmp.gt.f32.partialorder %v3433_v11, 0.5  ;;  %v3500_v50 = vld [vmem:[%s4282_s3 + $0x8] sm:$0xf] }
 0x315   : > { %v1795_v57 = vcombine.low %v1792_v56, %v1791_v55  ;;  %v1798_v1 = vsel %vm209_vm11, %v1790_v62, %v1779_v49  ;;  %vm219_vm11 = vcmp.gt.f32.partialorder %v3435_v17, 0.5  ;;  %v3506_v55 = vld [vmem:[%s4282_s3 + $0xc] sm:$0xf] }
 0x317   : > { %v1797_v60 = vsel %vm208_vm15, %v1795_v57, %v1778_v46  ;;  %vm1827_vm15 = vcmp.lt.s32.totalorder %v3828_v5, 2 }
 0x318   : > { %1802 = vrot.lane.b32.xlu0 %v1797_v60, %s3721_s7  ;;  %v1800_v63 = vcombine.high %v1797_v60, %v1797_v60 }
 0x31a   : > { %1804 = vrot.lane.b32.xlu1 %v1800_v63, %s3721_s7  ;;  %v3512_v63 = vld [vmem:[%s4282_s3 + $0x10] sm:$0xf] }
 0x31c   : > { %1806 = vrot.lane.b32.xlu0 %v1798_v1, %s3721_s7 }
 0x38a   : > { %v1803_v2 = vpop.permute.xlu0 %1802 }
 0x38c   : > { %v1805_v4 = vpop.permute.xlu1 %1804 }
 0x38d   : > { %v1810_v8 = vsel %vm1808_vm12, %v1803_v2, %v1805_v4 }
 0x38e   : > { %v1807_v7 = vpop.permute.xlu0 %1806 }
 0x38f   : > { %v1809_v9 = vsel %vm1808_vm12, %v1805_v4, %v1807_v7  ;;  %v1811_v13 = vsel %vm1808_vm12, %v1807_v7, %v1803_v2  ;;  %vm218_vm12 = vcmp.gt.f32.partialorder %v3434_v19, 0.5 }
 0x390   : > { %v1814_v10 = vcombine.low %v1810_v8, %v1809_v9  ;;  %v1817_v15 = vsel %vm214_vm14, %v1811_v13, %v1798_v1  ;;  %v3518_v8 = vld [vmem:[%s4282_s3 + $0x14] sm:$0xf]  ;;  %v3524_v13 = vld [vmem:[%s4282_s3 + $0x18] sm:$0xf] }
 0x392   : > { %v1816_v12 = vsel %vm213_vm13, %v1814_v10, %v1797_v60 }
 0x393   : > { %1821 = vrot.lane.b32.xlu1 %v1816_v12, %s3722_s12  ;;  %v1819_v14 = vcombine.high %v1816_v12, %v1816_v12 }
 0x395   : > { %1823 = vrot.lane.b32.xlu0 %v1819_v14, %s3722_s12 }
 0x397   : > { %1825 = vrot.lane.b32.xlu1 %v1817_v15, %s3722_s12 }
 0x405   : > { %v1822_v16 = vpop.permute.xlu1 %1821 }
 0x407   : > { %v1824_v18 = vpop.permute.xlu0 %1823 }
 0x408   : > { %v1829_v21 = vsel %vm1827_vm15, %v1822_v16, %v1824_v18 }
 0x409   : > { %v1826_v20 = vpop.permute.xlu1 %1825 }
 0x40a   : > { %v1828_v22 = vsel %vm1827_vm15, %v1824_v18, %v1826_v20  ;;  %v1830_v23 = vsel %vm1827_vm15, %v1826_v20, %v1822_v16  ;;  %v3530_v20 = vld [vmem:[%s4282_s3 + $0x1c] sm:$0xf] }
 0x40b   : > { %v1833_v24 = vcombine.low %v1830_v23, %v1829_v21  ;;  %v4048_v25 = vsel %vm219_vm11, %v1828_v22, %v1817_v15 }
 0x40c   : > { %1845 = vrot.lane.b32.xlu1 %v4048_v25, %s3712_s22  ;;  %1855 = vrot.lane.b32.xlu0 %v4048_v25, %s3711_s21 }
 0x40d   : > { %v4054_v26 = vsel %vm218_vm12, %v1833_v24, %v1816_v12 }
 0x40e   : > { %v4062_v27 = vcombine.high %v4054_v26, %v4054_v26 }
 0x410   : > { %1841 = vrot.lane.b32.xlu1 %v4054_v26, %s3712_s22  ;;  %2172 = vrot.lane.b32.xlu0 %v4048_v25, %s3713_s23 }
 0x414   : > { %1853 = vrot.lane.b32.xlu1 %v4062_v27, %s3711_s21  ;;  %1851 = vrot.lane.b32.xlu0 %v4054_v26, %s3711_s21 }
 0x418   : > { %2335 = vrot.lane.b32.xlu1 %v4054_v26, %s3714_s24  ;;  %2168 = vrot.lane.b32.xlu0 %v4054_v26, %s3713_s23 }
 0x41c   : > { %2170 = vrot.lane.b32.xlu1 %v4062_v27, %s3713_s23  ;;  %1843 = vrot.lane.b32.xlu0 %v4062_v27, %s3712_s22 }
 0x420   : > { %2339 = vrot.lane.b32.xlu1 %v4048_v25, %s3714_s24  ;;  %2657 = vrot.lane.b32.xlu0 %v4054_v26, %s3715_s25 }
 0x424   : > { %2661 = vrot.lane.b32.xlu1 %v4048_v25, %s3715_s25  ;;  %2337 = vrot.lane.b32.xlu0 %v4062_v27, %s3714_s24 }
 0x428   : > { %2824 = vrot.lane.b32.xlu1 %v4054_v26, %s3716_s26  ;;  %2828 = vrot.lane.b32.xlu0 %v4048_v25, %s3716_s26 }
 0x42c   : > { %2826 = vrot.lane.b32.xlu1 %v4062_v27, %s3716_s26  ;;  %2659 = vrot.lane.b32.xlu0 %v4062_v27, %s3715_s25 }
 0x430   : > { %2995 = vrot.lane.b32.xlu1 %v4048_v25, %s3717_s27  ;;  %2991 = vrot.lane.b32.xlu0 %v4054_v26, %s3717_s27 }
 0x434   : > { %3160 = vrot.lane.b32.xlu1 %v4062_v27, %s3718_s28  ;;  %2993 = vrot.lane.b32.xlu0 %v4062_v27, %s3717_s27 }
 0x438   : > { %3158 = vrot.lane.b32.xlu1 %v4054_v26, %s3718_s28  ;;  %3162 = vrot.lane.b32.xlu0 %v4048_v25, %s3718_s28 }
 0x47e   : > { %v1846_v28 = vpop.permute.xlu1 %1845  ;;  %v1856_v29 = vpop.permute.xlu0 %1855 }
 0x482   : > { %v1842_v30 = vpop.permute.xlu1 %1841  ;;  %v2173_v31 = vpop.permute.xlu0 %2172 }
 0x483   : > { %v1849_v45 = vsel %vm234_vm4, %v1846_v28, %v1842_v30 }
 0x486   : > { %v1854_v32 = vpop.permute.xlu1 %1853  ;;  %v1852_v33 = vpop.permute.xlu0 %1851 }
 0x487   : > { %v1857_v35 = vsel %vm245_vm1, %v1854_v32, %v1856_v29  ;;  %v1858_v36 = vsel %vm245_vm1, %v1852_v33, %v1854_v32  ;;  %v1859_v37 = vsel %vm245_vm1, %v1856_v29, %v1852_v33 }
 0x488   : > { %3490 = vmatprep.subr.msk.mxu0 %vm255_vm2, %v1858_v36  ;;  %3626 = vmatpush3.msk.msra.mxu1 %vm255_vm2, %v1857_v35 }
 0x489   : > { %3491 = vmatpush1.msk.msra.mxu0 %vm255_vm2, %v1859_v37  ;;  %3628 = vmatmul.mubr.msk.f32.vlgmr.msra.gmra.mxu1 %vm251_vm3, %v3489_v34 }
 0x48a   : > { %v2336_v38 = vpop.permute.xlu1 %2335  ;;  %v2169_v39 = vpop.permute.xlu0 %2168  ;;  %3492 = vmatmul.mubr.msk.f32.vlgmr.msra.gmra.mxu0 %vm251_vm3, %v3489_v34  ;;  %3630 = vmatprep.subr.mxu1 %v3709_v0 }
 0x48b   : > { %3632 = vmatprep.mubr.msk.f32.mxu1 %vm3710_vm0, %v3709_v0  ;;  %2091 = vmatprep.mubr.f32.mxu0 %v3709_v0  ;;  %v2176_v51 = vsel %vm565_vm5, %v2173_v31, %v2169_v39 }
 0x48e   : > { %v2171_v40 = vpop.permute.xlu1 %2170  ;;  %v1844_v41 = vpop.permute.xlu0 %1843 }
 0x48f   : > { %v1847_v43 = vsel %vm234_vm4, %v1844_v41, %v1846_v28  ;;  %v1848_v44 = vsel %vm234_vm4, %v1842_v30, %v1844_v41  ;;  %v2174_v46 = vsel %vm565_vm5, %v2171_v40, %v2173_v31  ;;  %v2175_v47 = vsel %vm565_vm5, %v2169_v39, %v2171_v40 }
 0x490   : > { %3495 = vmatprep.subr.msk.mxu0 %vm255_vm2, %v1848_v44  ;;  %3631 = vmatpush3.msk.msra.mxu1 %vm255_vm2, %v1847_v43 }
 0x491   : > { %3496 = vmatpush1.msk.msra.mxu0 %vm255_vm2, %v1849_v45  ;;  %3633 = vmatmul.mubr.msk.f32.vlgmr.msra.gmra.mxu1 %vm251_vm3, %v1850_v42 }
 0x492   : > { %3635 = vmatprep.subr.mxu1 %v3709_v0  ;;  %v2340_v48 = vpop.permute.xlu1 %2339  ;;  %3497 = vmatmul.mubr.msk.f32.vlgmr.msra.gmra.mxu0 %vm251_vm3, %v1850_v42  ;;  %v2658_v49 = vpop.permute.xlu0 %2657 }
 0x493   : > { %3501 = vmatprep.subr.msk.mxu0 %vm255_vm2, %v2175_v47  ;;  %3636 = vmatpush3.msk.msra.mxu1 %vm255_vm2, %v2174_v46  ;;  %v2343_v59 = vsel %vm733_vm6, %v2340_v48, %v2336_v38 }
 0x494   : > { %3502 = vmatpush1.msk.msra.mxu0 %vm255_vm2, %v2176_v51  ;;  %3637 = vmatprep.mubr.msk.f32.mxu1 %vm3710_vm0, %v3709_v0 }
 0x495   : > { %2255 = vmatprep.mubr.f32.mxu0 %v3709_v0  ;;  %3638 = vmatmul.mubr.msk.f32.vlgmr.msra.gmra.mxu1 %vm251_vm3, %v3500_v50 }
 0x496   : > { %v2662_v53 = vpop.permute.xlu1 %2661  ;;  %3503 = vmatmul.mubr.msk.f32.vlgmr.msra.gmra.mxu0 %vm251_vm3, %v3500_v50  ;;  %v2338_v54 = vpop.permute.xlu0 %2337  ;;  %3640 = vmatprep.subr.mxu1 %v3709_v0 }
 0x497   : > { %v2341_v56 = vsel %vm733_vm6, %v2338_v54, %v2340_v48  ;;  %v2342_v57 = vsel %vm733_vm6, %v2336_v38, %v2338_v54  ;;  %3642 = vmatprep.mubr.msk.f32.mxu1 %vm3710_vm0, %v3709_v0  ;;  %2422 = vmatprep.mubr.f32.mxu0 %v3709_v0  ;;  %v2665_v1 = vsel %vm1056_vm7, %v2662_v53, %v2658_v49 }
 0x498   : > { %3507 = vmatprep.subr.msk.mxu0 %vm255_vm2, %v2342_v57  ;;  %3641 = vmatpush3.msk.msra.mxu1 %vm255_vm2, %v2341_v56 }
 0x499   : > { %3508 = vmatpush1.msk.msra.mxu0 %vm255_vm2, %v2343_v59  ;;  %3643 = vmatmul.mubr.msk.f32.vlgmr.msra.gmra.mxu1 %vm251_vm3, %v3506_v55 }
 0x49a   : > { %3645 = vmatprep.subr.mxu1 %v3709_v0  ;;  %v2825_v60 = vpop.permute.xlu1 %2824  ;;  %3509 = vmatmul.mubr.msk.f32.vlgmr.msra.gmra.mxu0 %vm251_vm3, %v3506_v55  ;;  %v2829_v62 = vpop.permute.xlu0 %2828 }
 0x49b   : > { %3513 = vmatprep.subr.msk.mxu0 %vm255_vm2, %v4062_v27  ;;  %3646 = vmatpush3.msk.msra.mxu1 %vm255_vm2, %v4048_v25  ;;  %v2832_v9 = vsel %vm1224_vm8, %v2829_v62, %v2825_v60 }
 0x49c   : > { %3514 = vmatpush1.msk.msra.mxu0 %vm255_vm2, %v4054_v26  ;;  %3647 = vmatprep.mubr.msk.f32.mxu1 %vm3710_vm0, %v3709_v0  ;;  %v3536_v26 = vld [vmem:[%s4282_s3 + $0x20] sm:$0xf] }
 0x49d   : > { %3650 = vmatprep.subr.mxu1 %v3709_v0  ;;  %2577 = vmatprep.mubr.f32.mxu0 %v3709_v0 }
 0x49e   : > { %3648 = vmatmul.mubr.msk.f32.vlgmr.msra.gmra.mxu1 %vm251_vm3, %v3512_v63  ;;  %v2827_v2 = vpop.permute.xlu1 %2826  ;;  %3515 = vmatmul.mubr.msk.f32.vlgmr.msra.gmra.mxu0 %vm251_vm3, %v3512_v63  ;;  %v2660_v4 = vpop.permute.xlu0 %2659 }
 0x49f   : > { %3651 = vmatpush3.msk.msra.mxu1 %vm255_vm2, %v2665_v1  ;;  %v2663_v6 = vsel %vm1056_vm7, %v2660_v4, %v2662_v53  ;;  %v2664_v7 = vsel %vm1056_vm7, %v2658_v49, %v2660_v4  ;;  %3652 = vmatprep.mubr.msk.f32.mxu1 %vm3710_vm0, %v3709_v0  ;;  %v2830_v12 = vsel %vm1224_vm8, %v2827_v2, %v2829_v62 }
 0x4a0   : > { %3519 = vmatprep.subr.msk.mxu0 %vm255_vm2, %v2663_v6  ;;  %3655 = vmatprep.subr.mxu1 %v3709_v0  ;;  %v2831_v14 = vsel %vm1224_vm8, %v2825_v60, %v2827_v2 }
 0x4a1   : > { %3520 = vmatpush1.msk.msra.mxu0 %vm255_vm2, %v2664_v7  ;;  %2744 = vmatprep.mubr.f32.mxu0 %v3709_v0 }
 0x4a2   : > { %3653 = vmatmul.mubr.msk.f32.vlgmr.msra.gmra.mxu1 %vm251_vm3, %v3518_v8  ;;  %v2996_v10 = vpop.permute.xlu1 %2995  ;;  %v2992_v11 = vpop.permute.xlu0 %2991  ;;  %3521 = vmatmul.mubr.msk.f32.vlgmr.msra.gmra.mxu0 %vm251_vm3, %v3518_v8 }
 0x4a3   : > { %3656 = vmatpush3.msk.msra.mxu1 %vm255_vm2, %v2832_v9  ;;  %3525 = vmatprep.subr.msk.mxu0 %vm255_vm2, %v2830_v12  ;;  %v2999_v15 = vsel %vm1392_vm9, %v2996_v10, %v2992_v11 }
 0x4a4   : > { %3657 = vmatprep.mubr.msk.f32.mxu1 %vm3710_vm0, %v3709_v0  ;;  %3526 = vmatpush1.msk.msra.mxu0 %vm255_vm2, %v2831_v14 }
 0x4a5   : > { %3660 = vmatprep.subr.mxu1 %v3709_v0  ;;  %2911 = vmatprep.mubr.f32.mxu0 %v3709_v0 }
 0x4a6   : > { %3658 = vmatmul.mubr.msk.f32.vlgmr.msra.gmra.mxu1 %vm251_vm3, %v3524_v13  ;;  %v3161_v16 = vpop.permute.xlu1 %3160  ;;  %v2994_v17 = vpop.permute.xlu0 %2993  ;;  %3527 = vmatmul.mubr.msk.f32.vlgmr.msra.gmra.mxu0 %vm251_vm3, %v3524_v13 }
 0x4a7   : > { %3661 = vmatpush3.msk.msra.mxu1 %vm255_vm2, %v2999_v15  ;;  %v2997_v18 = vsel %vm1392_vm9, %v2994_v17, %v2996_v10  ;;  %v2998_v19 = vsel %vm1392_vm9, %v2992_v11, %v2994_v17  ;;  %3662 = vmatprep.mubr.msk.f32.mxu1 %vm3710_vm0, %v3709_v0 }
 0x4a8   : > { %3531 = vmatprep.subr.msk.mxu0 %vm255_vm2, %v2997_v18  ;;  %3078 = vmatprep.mubr.f32.mxu0 %v3709_v0 }
 0x4a9   : > { %3532 = vmatpush1.msk.msra.mxu0 %vm255_vm2, %v2998_v19  ;;  %3665 = vmatprep.subr.mxu1 %v3709_v0 }
 0x4aa   : > { %3663 = vmatmul.mubr.msk.f32.vlgmr.msra.gmra.mxu1 %vm251_vm3, %v3530_v20  ;;  %v3159_v21 = vpop.permute.xlu1 %3158  ;;  %v3163_v22 = vpop.permute.xlu0 %3162  ;;  %3533 = vmatmul.mubr.msk.f32.vlgmr.msra.gmra.mxu0 %vm251_vm3, %v3530_v20 }
 0x4ab   : > { %v3165_v23 = vsel %vm1560_vm10, %v3159_v21, %v3161_v16  ;;  %v3164_v24 = vsel %vm1560_vm10, %v3161_v16, %v3163_v22  ;;  %v3166_v25 = vsel %vm1560_vm10, %v3163_v22, %v3159_v21  ;;  %3667 = vmatprep.mubr.msk.f32.mxu1 %vm3710_vm0, %v3709_v0  ;;  %3245 = vmatprep.mubr.f32.mxu0 %v3709_v0 }
 0x4ac   : > { %3537 = vmatprep.subr.msk.mxu0 %vm255_vm2, %v3164_v24  ;;  %3666 = vmatpush3.msk.msra.mxu1 %vm255_vm2, %v3166_v25 }
 0x4ad   : > { %3538 = vmatpush1.msk.msra.mxu0 %vm255_vm2, %v3165_v23 }
 0x4ae   : > { %3668 = vmatmul.mubr.msk.f32.vlgmr.msra.gmra.mxu1 %vm251_vm3, %v3536_v26  ;;  %3539 = vmatmul.mubr.msk.f32.vlgmr.msra.gmra.mxu0 %vm251_vm3, %v3536_v26 }
 0x549   : > { %v2011_v5 = vpop.f32.mrf.mxu1 }
 0x54a   : > { %v1940_v28 = vpop.f32.mrf.mxu0 }
 0x54b   : > { %v3629_v27 = vpop.f32.mrf.mxu1 }
 0x54c   : > { %v1942_v29 = vpop.f32.mrf.mxu0 }
 0x551   : > { %v2164_v30 = vpop.f32.mrf.mxu1 }
 0x552   : > { %v2093_v31 = vpop.f32.mrf.mxu0  ;;  %v2165_v43 = vadd.f32 %v2164_v30, %v2011_v5 }
 0x553   : > { %v3634_v32 = vpop.f32.mrf.mxu1  ;;  %v2094_v46 = vadd.f32 %v2093_v31, %v1940_v28 }
 0x554   : > { %v2095_v33 = vpop.f32.mrf.mxu0 }
 0x555   : > { %v2328_v34 = vpop.f32.mrf.mxu1  ;;  %v2096_v50 = vadd.f32 %v2095_v33, %v1942_v29 }
 0x556   : > { %v2257_v35 = vpop.f32.mrf.mxu0  ;;  %v2334_v48 = vadd.f32 %v2328_v34, %v2165_v43 }
 0x557   : > { %v3639_v36 = vpop.f32.mrf.mxu1  ;;  %v2332_v51 = vadd.f32 %v2257_v35, %v2094_v46 }
 0x558   : > { %v2259_v37 = vpop.f32.mrf.mxu0 }
 0x559   : > { %v2495_v38 = vpop.f32.mrf.mxu1  ;;  %v2333_v56 = vadd.f32 %v2259_v37, %v2096_v50 }
 0x55a   : > { %v2424_v39 = vpop.f32.mrf.mxu0  ;;  %v2501_v54 = vadd.f32 %v2495_v38, %v2334_v48 }
 0x55b   : > { %v3644_v40 = vpop.f32.mrf.mxu1  ;;  %v2499_v57 = vadd.f32 %v2424_v39, %v2332_v51 }
 0x55c   : > { %v2426_v0 = vpop.f32.mrf.mxu0 }
 0x55d   : > { %v2500_v63 = vadd.f32 %v2426_v0, %v2333_v56  ;;  %v3700_v56 = vld [vmem:[%s3768_s20 + $0x8] sm:$0xf] }
 0x55e   : > { %v2650_v41 = vpop.f32.mrf.mxu1  ;;  %v2579_v42 = vpop.f32.mrf.mxu0 }
 0x55f   : > { %v2656_v60 = vadd.f32 %v2650_v41, %v2501_v54  ;;  %v2654_v1 = vadd.f32 %v2579_v42, %v2499_v57 }
 0x560   : > { %v3649_v44 = vpop.f32.mrf.mxu1  ;;  %v2581_v45 = vpop.f32.mrf.mxu0 }
 0x561   : > { %v2655_v7 = vadd.f32 %v2581_v45, %v2500_v63 }
 0x562   : > { %v2817_v47 = vpop.f32.mrf.mxu1  ;;  %v2746_v49 = vpop.f32.mrf.mxu0 }
 0x563   : > { %v2823_v4 = vadd.f32 %v2817_v47, %v2656_v60  ;;  %v2821_v8 = vadd.f32 %v2746_v49, %v2654_v1 }
 0x564   : > { %v3654_v53 = vpop.f32.mrf.mxu1  ;;  %v2748_v55 = vpop.f32.mrf.mxu0 }
 0x565   : > { %v2822_v12 = vadd.f32 %v2748_v55, %v2655_v7  ;;  %v3699_v53 = vld [vmem:[%s3768_s20] sm:$0xff] }
 0x566   : > { %v2984_v59 = vpop.f32.mrf.mxu1  ;;  %v2913_v62 = vpop.f32.mrf.mxu0 }
 0x567   : > { %v2990_v10 = vadd.f32 %v2984_v59, %v2823_v4  ;;  %v2988_v13 = vadd.f32 %v2913_v62, %v2821_v8 }
 0x568   : > { %v3659_v2 = vpop.f32.mrf.mxu1  ;;  %v2915_v6 = vpop.f32.mrf.mxu0 }
 0x569   : > { %v2989_v17 = vadd.f32 %v2915_v6, %v2822_v12 }
 0x56a   : > { %v3151_v9 = vpop.f32.mrf.mxu1  ;;  %v3080_v11 = vpop.f32.mrf.mxu0 }
 0x56b   : > { %v3157_v15 = vadd.f32 %v3151_v9, %v2990_v10  ;;  %v3155_v18 = vadd.f32 %v3080_v11, %v2988_v13 }
 0x56c   : > { %v3664_v14 = vpop.f32.mrf.mxu1  ;;  %v3082_v16 = vpop.f32.mrf.mxu0 }
 0x56d   : > { %v3156_v22 = vadd.f32 %v3082_v16, %v2989_v17 }
 0x56e   : > { %v3318_v19 = vpop.f32.mrf.mxu1  ;;  %v3247_v21 = vpop.f32.mrf.mxu0 }
 0x56f   : > { %v3324_v20 = vadd.f32 %v3318_v19, %v3157_v15  ;;  %v3322_v23 = vadd.f32 %v3247_v21, %v3155_v18 }
 0x570   : > { %v3669_v24 = vpop.f32.mrf.mxu1  ;;  %v3249_v25 = vpop.f32.mrf.mxu0 }
 0x571   : > { %v3325_v26 = vmul.f32 %v3322_v23, %v4000_v52  ;;  %v3323_v5 = vadd.f32 %v3249_v25, %v3156_v22  ;;  %v3327_v27 = vmul.f32 %v3324_v20, %v4005_v58 }
 0x573   : > { %v3335_v28 = vmul.f32 %v3325_v26, %v3322_v23  ;;  %v3326_v29 = vmul.f32 %v3323_v5, %v4009_v61  ;;  %v3328_v31 = vsel %vm255_vm2, %v3325_v26, 0.0  ;;  %v3337_v33 = vmul.f32 %v3327_v27, %v3324_v20 }
 0x574   : > { %v3331_v35 = vsel %vm255_vm2, %v3327_v27, 0.0 }
 0x575   : > { %v3336_v30 = vmul.f32 %v3326_v29, %v3323_v5  ;;  %v3329_v32 = vsel %vm255_vm2, %v3326_v29, 0.0  ;;  %v3338_v36 = vsel %vm255_vm2, %v3335_v28, 0.0  ;;  %v3341_v58 = vsel %vm255_vm2, %v3337_v33, 0.0 }
 0x576   : > { %v3330_v34 = vadd.f32 %v3329_v32, %v3328_v31 }
 0x577   : > { %v3339_v37 = vsel %vm255_vm2, %v3336_v30, 0.0 }
 0x578   : > { %v3332_v52 = vadd.f32 %v3331_v35, %v3330_v34  ;;  %v3340_v38 = vadd.f32 %v3339_v37, %v3338_v36 }
 0x57a   : > { %3333 = vadd.xlane.f32.xlu0 %v3332_v52  ;;  %v3342_v39 = vadd.f32 %v3341_v58, %v3340_v38 }
 0x57c   : > { %3343 = vadd.xlane.f32.xlu1 %v3342_v39 }
 0x603   : > { %v3334_v61 = vpop.xlane.xlu0 %3333 }
 0x604   : > { %v3345_v40 = vmul.f32 0.00390625, %v3334_v61 }
 0x605   : > { %v3344_v0 = vpop.xlane.xlu1 %3343 }
 0x606   : > { %v3346_v41 = vmul.f32 0.00390625, %v3344_v0  ;;  %v3347_v42 = vmul.f32 %v3345_v40, %v3345_v40  ;;  %v3349_v45 = vsub.f32 %v3322_v23, %v3345_v40  ;;  %v3350_v46 = vsub.f32 %v3323_v5, %v3345_v40 }
 0x607   : > { %v3351_v47 = vsub.f32 %v3324_v20, %v3345_v40 }
 0x608   : > { %v3348_v43 = vsub.f32 %v3346_v41, %v3347_v42 }
 0x60a   : > { %v3352_v44 = vadd.f32 1e-05, %v3348_v43 }
 0x60c   : > { %3697 = vrsqrt.f32 %v3352_v44 }
 0x619   : > { %v3698_v48 = vpop.eup %3697 }
 0x61a   : > { %v3354_v49 = vmul.f32 %v3698_v48, %v3349_v45  ;;  %v3355_v50 = vmul.f32 %v3698_v48, %v3350_v46  ;;  %v3356_v51 = vmul.f32 %v3698_v48, %v3351_v47 }
 0x61c   : > { %v3357_v54 = vadd.f32 %v3699_v53, %v3354_v49  ;;  %v3358_v55 = vadd.f32 %v3355_v50, %v3782_v3  ;;  %v3359_v57 = vadd.f32 %v3700_v56, %v3356_v51 }
 0x61e   : > { %v3362_v59 = vcombine.low %v3357_v54, %v3358_v55  ;;  %3365 = vst [vmem:[%s197_s18 + $0x8] sm:$0xf] %v3359_v57 }
 0x620   : > { %3364 = vst [vmem:[%s197_s18] sm:$0xff] %v3362_v59 }
 0x621 PF: > { %s14_s15 = sadd.s32 1, %s3707_s15  }
 0x622   : > { %p11_p4 = scmp.ge.s32.totalorder %s14_s15, 4  }
 0x624   :  { %13 = sbr.rel (!%p11_p4) target bundleno = 1 (0x1), region = 86 }

</bundles_post_ra>
